<compile_context>
chip_gen: v6e
topology: v6e:2x2x1
jax: 0.10.0
libtpu: 0.0.40
codegen_flags: <defaults>
</compile_context>

<pallas_src>
import jax
import jax.numpy as jnp
from jax.experimental import pallas as pl
from jax.experimental.pallas import tpu as pltpu

# ---- small synthetic XLM-R config ----
VOCAB = 100
HIDDEN = 32
HEADS = 2
HEAD_DIM = HIDDEN // HEADS
LAYERS = 2
INTER = 64
MAX_POS = 20
PAD_IDX = 1
NUM_CLASSES = 2
LN_EPS = 1e-5
OUT_LANES = 128          # lane-dense padded width for the logits slab


# ----------------- fused whole-model kernel -----------------
def _fused_kernel(emb_ref, mask_ref,
                  emb_g_ref, emb_b_ref,
                  qkv_w_ref, qkv_b_ref, o_w_ref, o_b_ref,
                  attn_g_ref, attn_b_ref,
                  i_w_ref, i_b_ref, fo_w_ref, fo_b_ref,
                  ffn_g_ref, ffn_b_ref,
                  pool_w_ref, pool_b_ref,
                  ff1_w_ref, ff1_b_ref, ff2_w_ref, ff2_b_ref,
                  out_ref):
    scale = 1.0 / (HEAD_DIM ** 0.5)

    def layernorm(y, g, b):
        mu = jnp.mean(y, axis=-1, keepdims=True)
        var = jnp.mean((y - mu) ** 2, axis=-1, keepdims=True)
        return (y - mu) * jax.lax.rsqrt(var + LN_EPS) * g + b

    def gelu(y):
        # tanh-approx GELU (HF XLM-R uses exact erf GELU; numerically very close)
        return 0.5 * y * (1.0 + jnp.tanh(0.7978845608028654 *
                                         (y + 0.044715 * y * y * y)))

    x = emb_ref[0]          # (S, H)  this batch element's token slab
    add_mask = mask_ref[0]  # (1, S)  additive mask (0 / -1e9)

    # embedding LayerNorm (no residual)
    x = layernorm(x, emb_g_ref[...], emb_b_ref[...])
    # TODO(synk): dropout layers are identity here (eval/inference mode).

    for l in range(LAYERS):
        # fused QKV projection: one (S,H) @ (H,3H) matmul
        qkv = jnp.dot(x, qkv_w_ref[l],
                      preferred_element_type=jnp.float32) + qkv_b_ref[l]

        # multi-head attention, heads unrolled in-kernel (no wrapper transposes)
        ctx_heads = []
        for h in range(HEADS):
            c0 = h * HEAD_DIM
            q = qkv[:, c0:c0 + HEAD_DIM]                           # (S, d)
            k = qkv[:, HIDDEN + c0:HIDDEN + c0 + HEAD_DIM]         # (S, d)
            v = qkv[:, 2 * HIDDEN + c0:2 * HIDDEN + c0 + HEAD_DIM]  # (S, d)
            s = jax.lax.dot_general(q, k, (((1,), (1,)), ((), ())),
                                    preferred_element_type=jnp.float32)
            s = s * scale + add_mask
            s = s - jnp.max(s, axis=-1, keepdims=True)
            p = jnp.exp(s)
            p = p * pl.reciprocal(jnp.sum(p, axis=-1, keepdims=True), approx=True)
            ctx_heads.append(jnp.dot(p, v, preferred_element_type=jnp.float32))
        ctx = jnp.concatenate(ctx_heads, axis=-1)                   # (S, H)

        # output projection + residual + LayerNorm
        attn_out = jnp.dot(ctx, o_w_ref[l],
                           preferred_element_type=jnp.float32) + o_b_ref[l]
        x = layernorm(attn_out + x, attn_g_ref[l], attn_b_ref[l])

        # FFN + residual + LayerNorm
        inter = jnp.dot(x, i_w_ref[l],
                        preferred_element_type=jnp.float32) + i_b_ref[l]
        inter = gelu(inter)
        ffn_out = jnp.dot(inter, fo_w_ref[l],
                          preferred_element_type=jnp.float32) + fo_b_ref[l]
        x = layernorm(ffn_out + x, ffn_g_ref[l], ffn_b_ref[l])

    # pooler (dense + tanh) computed on all S rows (row 0 is the CLS token); the
    # wrapper keeps only row 0 per batch.  Keeps the store fully (8,128) dense.
    pooled = jnp.tanh(jnp.dot(x, pool_w_ref[...],
                              preferred_element_type=jnp.float32) + pool_b_ref[...])
    h1 = jnp.dot(pooled, ff1_w_ref[...],
                 preferred_element_type=jnp.float32) + ff1_b_ref[...]
    # TODO(synk): ClassificationHead dropout is identity (inference mode).
    logits = jnp.dot(h1, ff2_w_ref[...],
                     preferred_element_type=jnp.float32) + ff2_b_ref[...]  # (S, 128)
    out_ref[...] = logits.astype(out_ref.dtype)


def _full_spec(arr):
    """Whole-array block, same block for every grid step (weights)."""
    nd = arr.ndim
    return pl.BlockSpec(arr.shape, lambda b, nd=nd: (0,) * nd)


# ----------------- parameters -----------------
def init_params(key):
    def nrm(k, shape, scale=0.02):
        return scale * jax.random.normal(k, shape, dtype=jnp.float32)

    keys = iter(jax.random.split(key, 256))
    p = {
        "word_emb": nrm(next(keys), (VOCAB, HIDDEN)),
        "pos_emb": nrm(next(keys), (MAX_POS, HIDDEN)),
        "type_emb": nrm(next(keys), (1, HIDDEN)),
        "emb_ln_g": jnp.ones((HIDDEN,), jnp.float32),
        "emb_ln_b": jnp.zeros((HIDDEN,), jnp.float32),
        "layers": [],
    }
    for _ in range(LAYERS):
        p["layers"].append({
            "q_w": nrm(next(keys), (HIDDEN, HIDDEN)), "q_b": nrm(next(keys), (HIDDEN,)),
            "k_w": nrm(next(keys), (HIDDEN, HIDDEN)), "k_b": nrm(next(keys), (HIDDEN,)),
            "v_w": nrm(next(keys), (HIDDEN, HIDDEN)), "v_b": nrm(next(keys), (HIDDEN,)),
            "o_w": nrm(next(keys), (HIDDEN, HIDDEN)), "o_b": nrm(next(keys), (HIDDEN,)),
            "attn_ln_g": jnp.ones((HIDDEN,), jnp.float32),
            "attn_ln_b": jnp.zeros((HIDDEN,), jnp.float32),
            "i_w": nrm(next(keys), (HIDDEN, INTER)), "i_b": nrm(next(keys), (INTER,)),
            "fo_w": nrm(next(keys), (INTER, HIDDEN)), "fo_b": nrm(next(keys), (HIDDEN,)),
            "ffn_ln_g": jnp.ones((HIDDEN,), jnp.float32),
            "ffn_ln_b": jnp.zeros((HIDDEN,), jnp.float32),
        })
    p["pool_w"] = nrm(next(keys), (HIDDEN, HIDDEN))
    p["pool_b"] = nrm(next(keys), (HIDDEN,))
    # ClassificationHead(in_dim=HIDDEN, out_dim=2): ff1 HIDDEN->HIDDEN//2, ff2 ->2
    p["ff1_w"] = nrm(next(keys), (HIDDEN, HIDDEN // 2))
    p["ff1_b"] = nrm(next(keys), (HIDDEN // 2,))
    p["ff2_w"] = nrm(next(keys), (HIDDEN // 2, NUM_CLASSES))
    p["ff2_b"] = nrm(next(keys), (NUM_CLASSES,))
    return p


# ----------------- forward pass -----------------
def xlmr_classifier_forward(params, input_ids, attention_mask):
    B, S = input_ids.shape
    mask_i = attention_mask.astype(jnp.int32)

    # XLM-R position ids: cumulative index of non-pad tokens, offset by padding_idx.
    pos_ids = jnp.cumsum(mask_i, axis=1) * mask_i + PAD_IDX
    # Embedding gathers are JAX glue (data-dependent gather outside the kernel).
    emb = (jnp.take(params["word_emb"], input_ids, axis=0)
           + jnp.take(params["pos_emb"], pos_ids, axis=0)
           + params["type_emb"][0]).astype(jnp.float32)          # (B, S, H)

    add_mask = ((1.0 - attention_mask.astype(jnp.float32)) * -1e9)[:, None, :]  # (B,1,S)

    # ---- pack / stack weights for the fused kernel ----
    L = params["layers"]
    qkv_w = jnp.stack([jnp.concatenate([l["q_w"], l["k_w"], l["v_w"]], axis=1) for l in L])
    qkv_b = jnp.stack([jnp.concatenate([l["q_b"], l["k_b"], l["v_b"]])[None, :] for l in L])
    o_w = jnp.stack([l["o_w"] for l in L])
    o_b = jnp.stack([l["o_b"][None, :] for l in L])
    attn_g = jnp.stack([l["attn_ln_g"][None, :] for l in L])
    attn_b = jnp.stack([l["attn_ln_b"][None, :] for l in L])
    i_w = jnp.stack([l["i_w"] for l in L])
    i_b = jnp.stack([l["i_b"][None, :] for l in L])
    fo_w = jnp.stack([l["fo_w"] for l in L])
    fo_b = jnp.stack([l["fo_b"][None, :] for l in L])
    ffn_g = jnp.stack([l["ffn_ln_g"][None, :] for l in L])
    ffn_b = jnp.stack([l["ffn_ln_b"][None, :] for l in L])

    # pad the classifier output projection to a lane-dense 128-wide slab
    ff2_w = jnp.zeros((HIDDEN // 2, OUT_LANES), jnp.float32)
    ff2_w = ff2_w.at[:, :NUM_CLASSES].set(params["ff2_w"])
    ff2_b = jnp.zeros((1, OUT_LANES), jnp.float32)
    ff2_b = ff2_b.at[0, :NUM_CLASSES].set(params["ff2_b"])

    inputs = (
        emb, add_mask,
        params["emb_ln_g"][None, :], params["emb_ln_b"][None, :],
        qkv_w, qkv_b, o_w, o_b, attn_g, attn_b,
        i_w, i_b, fo_w, fo_b, ffn_g, ffn_b,
        params["pool_w"], params["pool_b"][None, :],
        params["ff1_w"], params["ff1_b"][None, :],
        ff2_w, ff2_b,
    )

    in_specs = [
        pl.BlockSpec((1, S, HIDDEN), lambda b: (b, 0, 0)),   # per-batch embeddings
        pl.BlockSpec((1, 1, S), lambda b: (b, 0, 0)),        # per-batch additive mask
    ] + [_full_spec(a) for a in inputs[2:]]

    out = pl.pallas_call(
        _fused_kernel,
        out_shape=jax.ShapeDtypeStruct((B * S, OUT_LANES), jnp.float32),
        grid=(B,),
        in_specs=in_specs,
        out_specs=pl.BlockSpec((S, OUT_LANES), lambda b: (b, 0)),
        compiler_params=pltpu.CompilerParams(dimension_semantics=("parallel",)),
    )(*inputs)

    # row 0 of each per-batch (S, 128) slab is the CLS-token logits
    logits = out.reshape(B, S, OUT_LANES)[:, 0, :NUM_CLASSES]
    return {"logits": logits}


if __name__ == "__main__":
    key = jax.random.PRNGKey(0)
    pkey, ikey = jax.random.split(key)
    params = init_params(pkey)

    B, S = 2, 8
    input_ids = jax.random.randint(ikey, (B, S), 2, VOCAB, dtype=jnp.int32)
    attention_mask = jnp.array([[1, 1, 1, 1, 1, 1, 1, 1],
                                [1, 1, 1, 1, 1, 1, 0, 0]], dtype=jnp.int32)
    # pad positions get PAD_IDX token id, like a real tokenized batch
    input_ids = jnp.where(attention_mask == 1, input_ids, PAD_IDX)

    out = xlmr_classifier_forward(params, input_ids, attention_mask)
    logits = jax.block_until_ready(out["logits"])
    assert logits.shape == (B, NUM_CLASSES)
    assert bool(jnp.all(jnp.isfinite(logits)))
    print("KERNEL_OK")
</pallas_src>

<mosaic_0001>
module attributes {stable_mosaic.version = 11 : i64} {
  func.func @_fused_kernel(%arg0: i32, %arg1: memref<1x8x32xf32, #tpu.memory_space<vmem>>, %arg2: memref<1x1x8xf32, #tpu.memory_space<vmem>>, %arg3: memref<1x32xf32, #tpu.memory_space<vmem>>, %arg4: memref<1x32xf32, #tpu.memory_space<vmem>>, %arg5: memref<2x32x96xf32, #tpu.memory_space<vmem>>, %arg6: memref<2x1x96xf32, #tpu.memory_space<vmem>>, %arg7: memref<2x32x32xf32, #tpu.memory_space<vmem>>, %arg8: memref<2x1x32xf32, #tpu.memory_space<vmem>>, %arg9: memref<2x1x32xf32, #tpu.memory_space<vmem>>, %arg10: memref<2x1x32xf32, #tpu.memory_space<vmem>>, %arg11: memref<2x32x64xf32, #tpu.memory_space<vmem>>, %arg12: memref<2x1x64xf32, #tpu.memory_space<vmem>>, %arg13: memref<2x64x32xf32, #tpu.memory_space<vmem>>, %arg14: memref<2x1x32xf32, #tpu.memory_space<vmem>>, %arg15: memref<2x1x32xf32, #tpu.memory_space<vmem>>, %arg16: memref<2x1x32xf32, #tpu.memory_space<vmem>>, %arg17: memref<32x32xf32, #tpu.memory_space<vmem>>, %arg18: memref<1x32xf32, #tpu.memory_space<vmem>>, %arg19: memref<32x16xf32, #tpu.memory_space<vmem>>, %arg20: memref<1x16xf32, #tpu.memory_space<vmem>>, %arg21: memref<16x128xf32, #tpu.memory_space<vmem>>, %arg22: memref<1x128xf32, #tpu.memory_space<vmem>>, %arg23: memref<8x128xf32, #tpu.memory_space<vmem>>) attributes {dimension_semantics = [#tpu.dimension_semantics<parallel>], iteration_bounds = array<i64: 2>, scalar_prefetch = 0 : i64, scratch_operands = 0 : i64, tpu.core_type = #tpu.core_type<tc>, window_params = [{transform_indices = @transform_0, window_bounds = array<i64: 1, 8, 32>}, {transform_indices = @transform_1, window_bounds = array<i64: 1, 1, 8>}, {pipeline_mode = #tpu.pipeline_mode<synchronous>, transform_indices = @transform_2, window_bounds = array<i64: 1, 32>}, {pipeline_mode = #tpu.pipeline_mode<synchronous>, transform_indices = @transform_3, window_bounds = array<i64: 1, 32>}, {pipeline_mode = #tpu.pipeline_mode<synchronous>, transform_indices = @transform_4, window_bounds = array<i64: 2, 32, 96>}, {pipeline_mode = #tpu.pipeline_mode<synchronous>, transform_indices = @transform_5, window_bounds = array<i64: 2, 1, 96>}, {pipeline_mode = #tpu.pipeline_mode<synchronous>, transform_indices = @transform_6, window_bounds = array<i64: 2, 32, 32>}, {pipeline_mode = #tpu.pipeline_mode<synchronous>, transform_indices = @transform_7, window_bounds = array<i64: 2, 1, 32>}, {pipeline_mode = #tpu.pipeline_mode<synchronous>, transform_indices = @transform_8, window_bounds = array<i64: 2, 1, 32>}, {pipeline_mode = #tpu.pipeline_mode<synchronous>, transform_indices = @transform_9, window_bounds = array<i64: 2, 1, 32>}, {pipeline_mode = #tpu.pipeline_mode<synchronous>, transform_indices = @transform_10, window_bounds = array<i64: 2, 32, 64>}, {pipeline_mode = #tpu.pipeline_mode<synchronous>, transform_indices = @transform_11, window_bounds = array<i64: 2, 1, 64>}, {pipeline_mode = #tpu.pipeline_mode<synchronous>, transform_indices = @transform_12, window_bounds = array<i64: 2, 64, 32>}, {pipeline_mode = #tpu.pipeline_mode<synchronous>, transform_indices = @transform_13, window_bounds = array<i64: 2, 1, 32>}, {pipeline_mode = #tpu.pipeline_mode<synchronous>, transform_indices = @transform_14, window_bounds = array<i64: 2, 1, 32>}, {pipeline_mode = #tpu.pipeline_mode<synchronous>, transform_indices = @transform_15, window_bounds = array<i64: 2, 1, 32>}, {pipeline_mode = #tpu.pipeline_mode<synchronous>, transform_indices = @transform_16, window_bounds = array<i64: 32, 32>}, {pipeline_mode = #tpu.pipeline_mode<synchronous>, transform_indices = @transform_17, window_bounds = array<i64: 1, 32>}, {pipeline_mode = #tpu.pipeline_mode<synchronous>, transform_indices = @transform_18, window_bounds = array<i64: 32, 16>}, {pipeline_mode = #tpu.pipeline_mode<synchronous>, transform_indices = @transform_19, window_bounds = array<i64: 1, 16>}, {pipeline_mode = #tpu.pipeline_mode<synchronous>, transform_indices = @transform_20, window_bounds = array<i64: 16, 128>}, {pipeline_mode = #tpu.pipeline_mode<synchronous>, transform_indices = @transform_21, window_bounds = array<i64: 1, 128>}, {transform_indices = @transform_22, window_bounds = array<i64: 8, 128>}]} {
    %c0 = arith.constant 0 : index
    %c0_0 = arith.constant 0 : index
    %c0_1 = arith.constant 0 : index
    %0 = vector.load %arg1[%c0, %c0_0, %c0_1] : memref<1x8x32xf32, #tpu.memory_space<vmem>>, vector<1x8x32xf32>
    %1 = vector.shape_cast %0 : vector<1x8x32xf32> to vector<8x32xf32>
    %c0_2 = arith.constant 0 : index
    %c0_3 = arith.constant 0 : index
    %c0_4 = arith.constant 0 : index
    %2 = vector.load %arg2[%c0_2, %c0_3, %c0_4] : memref<1x1x8xf32, #tpu.memory_space<vmem>>, vector<1x1x8xf32>
    %3 = vector.shape_cast %2 : vector<1x1x8xf32> to vector<1x8xf32>
    %c0_5 = arith.constant 0 : index
    %c0_6 = arith.constant 0 : index
    %4 = vector.load %arg3[%c0_5, %c0_6] : memref<1x32xf32, #tpu.memory_space<vmem>>, vector<1x32xf32>
    %c0_7 = arith.constant 0 : index
    %c0_8 = arith.constant 0 : index
    %5 = vector.load %arg4[%c0_7, %c0_8] : memref<1x32xf32, #tpu.memory_space<vmem>>, vector<1x32xf32>
    %cst = arith.constant dense<0.000000e+00> : vector<8xf32>
    %6 = vector.multi_reduction <add>, %1, %cst [1] : vector<8x32xf32> to vector<8xf32>
    %7 = vector.shape_cast %6 : vector<8xf32> to vector<8x1xf32>
    %cst_9 = arith.constant 3.200000e+01 : f32
    %8 = vector.broadcast %cst_9 : f32 to vector<8x1xf32>
    %9 = arith.divf %7, %8 : vector<8x1xf32>
    %10 = vector.broadcast %9 : vector<8x1xf32> to vector<8x32xf32>
    %11 = arith.subf %1, %10 : vector<8x32xf32>
    %12 = arith.mulf %11, %11 : vector<8x32xf32>
    %cst_10 = arith.constant dense<0.000000e+00> : vector<8xf32>
    %13 = vector.multi_reduction <add>, %12, %cst_10 [1] : vector<8x32xf32> to vector<8xf32>
    %14 = vector.shape_cast %13 : vector<8xf32> to vector<8x1xf32>
    %cst_11 = arith.constant 3.200000e+01 : f32
    %15 = vector.broadcast %cst_11 : f32 to vector<8x1xf32>
    %16 = arith.divf %14, %15 : vector<8x1xf32>
    %17 = vector.broadcast %9 : vector<8x1xf32> to vector<8x32xf32>
    %18 = arith.subf %1, %17 : vector<8x32xf32>
    %cst_12 = arith.constant 9.99999974E-6 : f32
    %19 = vector.broadcast %cst_12 : f32 to vector<8x1xf32>
    %20 = arith.addf %16, %19 : vector<8x1xf32>
    %21 = math.rsqrt %20 : vector<8x1xf32>
    %22 = vector.broadcast %21 : vector<8x1xf32> to vector<8x32xf32>
    %23 = arith.mulf %18, %22 : vector<8x32xf32>
    %24 = vector.broadcast %4 : vector<1x32xf32> to vector<8x32xf32>
    %25 = arith.mulf %23, %24 : vector<8x32xf32>
    %26 = vector.broadcast %5 : vector<1x32xf32> to vector<8x32xf32>
    %27 = arith.addf %25, %26 : vector<8x32xf32>
    %c0_13 = arith.constant 0 : index
    %c0_14 = arith.constant 0 : index
    %c0_15 = arith.constant 0 : index
    %28 = vector.load %arg5[%c0_13, %c0_14, %c0_15] : memref<2x32x96xf32, #tpu.memory_space<vmem>>, vector<1x32x96xf32>
    %29 = vector.shape_cast %28 : vector<1x32x96xf32> to vector<32x96xf32>
    %cst_16 = arith.constant dense<0.000000e+00> : vector<8x96xf32>
    %30 = tpu.matmul %27, %29, %cst_16 {dimension_numbers = #tpu.dot_dimension_numbers<[1], [0], [0], [1], [0, 0, 1, 1], [], []>} : vector<8x32xf32>, vector<32x96xf32>, vector<8x96xf32> -> vector<8x96xf32>
    %c0_17 = arith.constant 0 : index
    %c0_18 = arith.constant 0 : index
    %c0_19 = arith.constant 0 : index
    %31 = vector.load %arg6[%c0_17, %c0_18, %c0_19] : memref<2x1x96xf32, #tpu.memory_space<vmem>>, vector<1x1x96xf32>
    %32 = vector.shape_cast %31 : vector<1x1x96xf32> to vector<1x96xf32>
    %33 = vector.broadcast %32 : vector<1x96xf32> to vector<8x96xf32>
    %34 = arith.addf %30, %33 : vector<8x96xf32>
    %35 = vector.extract_strided_slice %34 {offsets = [0, 0], sizes = [8, 16], strides = [1, 1]} : vector<8x96xf32> to vector<8x16xf32>
    %36 = vector.extract_strided_slice %34 {offsets = [0, 32], sizes = [8, 16], strides = [1, 1]} : vector<8x96xf32> to vector<8x16xf32>
    %37 = vector.extract_strided_slice %34 {offsets = [0, 64], sizes = [8, 16], strides = [1, 1]} : vector<8x96xf32> to vector<8x16xf32>
    %cst_20 = arith.constant dense<0.000000e+00> : vector<8x8xf32>
    %38 = tpu.matmul %35, %36, %cst_20 {dimension_numbers = #tpu.dot_dimension_numbers<[1], [1], [0], [0], [0, 0, 1, 0], [], []>} : vector<8x16xf32>, vector<8x16xf32>, vector<8x8xf32> -> vector<8x8xf32>
    %cst_21 = arith.constant 2.500000e-01 : f32
    %39 = vector.broadcast %cst_21 : f32 to vector<8x8xf32>
    %40 = arith.mulf %38, %39 : vector<8x8xf32>
    %41 = vector.broadcast %3 : vector<1x8xf32> to vector<8x8xf32>
    %42 = arith.addf %40, %41 : vector<8x8xf32>
    %cst_22 = arith.constant dense<0xFF800000> : vector<8xf32>
    %43 = vector.multi_reduction <maximumf>, %42, %cst_22 [1] : vector<8x8xf32> to vector<8xf32>
    %44 = vector.shape_cast %43 : vector<8xf32> to vector<8x1xf32>
    %45 = vector.broadcast %44 : vector<8x1xf32> to vector<8x8xf32>
    %46 = arith.subf %42, %45 : vector<8x8xf32>
    %47 = math.exp %46 : vector<8x8xf32>
    %cst_23 = arith.constant dense<0.000000e+00> : vector<8xf32>
    %48 = vector.multi_reduction <add>, %47, %cst_23 [1] : vector<8x8xf32> to vector<8xf32>
    %49 = vector.shape_cast %48 : vector<8xf32> to vector<8x1xf32>
    %50 = tpu.reciprocal %49 {approx = true} : vector<8x1xf32> -> vector<8x1xf32>
    %51 = vector.broadcast %50 : vector<8x1xf32> to vector<8x8xf32>
    %52 = arith.mulf %47, %51 : vector<8x8xf32>
    %cst_24 = arith.constant dense<0.000000e+00> : vector<8x16xf32>
    %53 = tpu.matmul %52, %37, %cst_24 {dimension_numbers = #tpu.dot_dimension_numbers<[1], [0], [0], [1], [0, 0, 1, 1], [], []>} : vector<8x8xf32>, vector<8x16xf32>, vector<8x16xf32> -> vector<8x16xf32>
    %54 = vector.extract_strided_slice %34 {offsets = [0, 16], sizes = [8, 16], strides = [1, 1]} : vector<8x96xf32> to vector<8x16xf32>
    %55 = vector.extract_strided_slice %34 {offsets = [0, 48], sizes = [8, 16], strides = [1, 1]} : vector<8x96xf32> to vector<8x16xf32>
    %56 = vector.extract_strided_slice %34 {offsets = [0, 80], sizes = [8, 16], strides = [1, 1]} : vector<8x96xf32> to vector<8x16xf32>
    %cst_25 = arith.constant dense<0.000000e+00> : vector<8x8xf32>
    %57 = tpu.matmul %54, %55, %cst_25 {dimension_numbers = #tpu.dot_dimension_numbers<[1], [1], [0], [0], [0, 0, 1, 0], [], []>} : vector<8x16xf32>, vector<8x16xf32>, vector<8x8xf32> -> vector<8x8xf32>
    %cst_26 = arith.constant 2.500000e-01 : f32
    %58 = vector.broadcast %cst_26 : f32 to vector<8x8xf32>
    %59 = arith.mulf %57, %58 : vector<8x8xf32>
    %60 = vector.broadcast %3 : vector<1x8xf32> to vector<8x8xf32>
    %61 = arith.addf %59, %60 : vector<8x8xf32>
    %cst_27 = arith.constant dense<0xFF800000> : vector<8xf32>
    %62 = vector.multi_reduction <maximumf>, %61, %cst_27 [1] : vector<8x8xf32> to vector<8xf32>
    %63 = vector.shape_cast %62 : vector<8xf32> to vector<8x1xf32>
    %64 = vector.broadcast %63 : vector<8x1xf32> to vector<8x8xf32>
    %65 = arith.subf %61, %64 : vector<8x8xf32>
    %66 = math.exp %65 : vector<8x8xf32>
    %cst_28 = arith.constant dense<0.000000e+00> : vector<8xf32>
    %67 = vector.multi_reduction <add>, %66, %cst_28 [1] : vector<8x8xf32> to vector<8xf32>
    %68 = vector.shape_cast %67 : vector<8xf32> to vector<8x1xf32>
    %69 = tpu.reciprocal %68 {approx = true} : vector<8x1xf32> -> vector<8x1xf32>
    %70 = vector.broadcast %69 : vector<8x1xf32> to vector<8x8xf32>
    %71 = arith.mulf %66, %70 : vector<8x8xf32>
    %cst_29 = arith.constant dense<0.000000e+00> : vector<8x16xf32>
    %72 = tpu.matmul %71, %56, %cst_29 {dimension_numbers = #tpu.dot_dimension_numbers<[1], [0], [0], [1], [0, 0, 1, 1], [], []>} : vector<8x8xf32>, vector<8x16xf32>, vector<8x16xf32> -> vector<8x16xf32>
    %73 = tpu.concatenate %53, %72 in 1 : vector<8x16xf32>, vector<8x16xf32> -> vector<8x32xf32>
    %c0_30 = arith.constant 0 : index
    %c0_31 = arith.constant 0 : index
    %c0_32 = arith.constant 0 : index
    %74 = vector.load %arg7[%c0_30, %c0_31, %c0_32] : memref<2x32x32xf32, #tpu.memory_space<vmem>>, vector<1x32x32xf32>
    %75 = vector.shape_cast %74 : vector<1x32x32xf32> to vector<32x32xf32>
    %cst_33 = arith.constant dense<0.000000e+00> : vector<8x32xf32>
    %76 = tpu.matmul %73, %75, %cst_33 {dimension_numbers = #tpu.dot_dimension_numbers<[1], [0], [0], [1], [0, 0, 1, 1], [], []>} : vector<8x32xf32>, vector<32x32xf32>, vector<8x32xf32> -> vector<8x32xf32>
    %c0_34 = arith.constant 0 : index
    %c0_35 = arith.constant 0 : index
    %c0_36 = arith.constant 0 : index
    %77 = vector.load %arg8[%c0_34, %c0_35, %c0_36] : memref<2x1x32xf32, #tpu.memory_space<vmem>>, vector<1x1x32xf32>
    %78 = vector.shape_cast %77 : vector<1x1x32xf32> to vector<1x32xf32>
    %79 = vector.broadcast %78 : vector<1x32xf32> to vector<8x32xf32>
    %80 = arith.addf %76, %79 : vector<8x32xf32>
    %81 = arith.addf %80, %27 : vector<8x32xf32>
    %c0_37 = arith.constant 0 : index
    %c0_38 = arith.constant 0 : index
    %c0_39 = arith.constant 0 : index
    %82 = vector.load %arg9[%c0_37, %c0_38, %c0_39] : memref<2x1x32xf32, #tpu.memory_space<vmem>>, vector<1x1x32xf32>
    %83 = vector.shape_cast %82 : vector<1x1x32xf32> to vector<1x32xf32>
    %c0_40 = arith.constant 0 : index
    %c0_41 = arith.constant 0 : index
    %c0_42 = arith.constant 0 : index
    %84 = vector.load %arg10[%c0_40, %c0_41, %c0_42] : memref<2x1x32xf32, #tpu.memory_space<vmem>>, vector<1x1x32xf32>
    %85 = vector.shape_cast %84 : vector<1x1x32xf32> to vector<1x32xf32>
    %cst_43 = arith.constant dense<0.000000e+00> : vector<8xf32>
    %86 = vector.multi_reduction <add>, %81, %cst_43 [1] : vector<8x32xf32> to vector<8xf32>
    %87 = vector.shape_cast %86 : vector<8xf32> to vector<8x1xf32>
    %cst_44 = arith.constant 3.200000e+01 : f32
    %88 = vector.broadcast %cst_44 : f32 to vector<8x1xf32>
    %89 = arith.divf %87, %88 : vector<8x1xf32>
    %90 = vector.broadcast %89 : vector<8x1xf32> to vector<8x32xf32>
    %91 = arith.subf %81, %90 : vector<8x32xf32>
    %92 = arith.mulf %91, %91 : vector<8x32xf32>
    %cst_45 = arith.constant dense<0.000000e+00> : vector<8xf32>
    %93 = vector.multi_reduction <add>, %92, %cst_45 [1] : vector<8x32xf32> to vector<8xf32>
    %94 = vector.shape_cast %93 : vector<8xf32> to vector<8x1xf32>
    %cst_46 = arith.constant 3.200000e+01 : f32
    %95 = vector.broadcast %cst_46 : f32 to vector<8x1xf32>
    %96 = arith.divf %94, %95 : vector<8x1xf32>
    %97 = vector.broadcast %89 : vector<8x1xf32> to vector<8x32xf32>
    %98 = arith.subf %81, %97 : vector<8x32xf32>
    %cst_47 = arith.constant 9.99999974E-6 : f32
    %99 = vector.broadcast %cst_47 : f32 to vector<8x1xf32>
    %100 = arith.addf %96, %99 : vector<8x1xf32>
    %101 = math.rsqrt %100 : vector<8x1xf32>
    %102 = vector.broadcast %101 : vector<8x1xf32> to vector<8x32xf32>
    %103 = arith.mulf %98, %102 : vector<8x32xf32>
    %104 = vector.broadcast %83 : vector<1x32xf32> to vector<8x32xf32>
    %105 = arith.mulf %103, %104 : vector<8x32xf32>
    %106 = vector.broadcast %85 : vector<1x32xf32> to vector<8x32xf32>
    %107 = arith.addf %105, %106 : vector<8x32xf32>
    %c0_48 = arith.constant 0 : index
    %c0_49 = arith.constant 0 : index
    %c0_50 = arith.constant 0 : index
    %108 = vector.load %arg11[%c0_48, %c0_49, %c0_50] : memref<2x32x64xf32, #tpu.memory_space<vmem>>, vector<1x32x64xf32>
    %109 = vector.shape_cast %108 : vector<1x32x64xf32> to vector<32x64xf32>
    %cst_51 = arith.constant dense<0.000000e+00> : vector<8x64xf32>
    %110 = tpu.matmul %107, %109, %cst_51 {dimension_numbers = #tpu.dot_dimension_numbers<[1], [0], [0], [1], [0, 0, 1, 1], [], []>} : vector<8x32xf32>, vector<32x64xf32>, vector<8x64xf32> -> vector<8x64xf32>
    %c0_52 = arith.constant 0 : index
    %c0_53 = arith.constant 0 : index
    %c0_54 = arith.constant 0 : index
    %111 = vector.load %arg12[%c0_52, %c0_53, %c0_54] : memref<2x1x64xf32, #tpu.memory_space<vmem>>, vector<1x1x64xf32>
    %112 = vector.shape_cast %111 : vector<1x1x64xf32> to vector<1x64xf32>
    %113 = vector.broadcast %112 : vector<1x64xf32> to vector<8x64xf32>
    %114 = arith.addf %110, %113 : vector<8x64xf32>
    %cst_55 = arith.constant 5.000000e-01 : f32
    %115 = vector.broadcast %cst_55 : f32 to vector<8x64xf32>
    %116 = arith.mulf %115, %114 : vector<8x64xf32>
    %cst_56 = arith.constant 4.471500e-02 : f32
    %117 = vector.broadcast %cst_56 : f32 to vector<8x64xf32>
    %118 = arith.mulf %117, %114 : vector<8x64xf32>
    %119 = arith.mulf %118, %114 : vector<8x64xf32>
    %120 = arith.mulf %119, %114 : vector<8x64xf32>
    %121 = arith.addf %114, %120 : vector<8x64xf32>
    %cst_57 = arith.constant 0.797884583 : f32
    %122 = vector.broadcast %cst_57 : f32 to vector<8x64xf32>
    %123 = arith.mulf %122, %121 : vector<8x64xf32>
    %124 = math.tanh %123 : vector<8x64xf32>
    %cst_58 = arith.constant 1.000000e+00 : f32
    %125 = vector.broadcast %cst_58 : f32 to vector<8x64xf32>
    %126 = arith.addf %125, %124 : vector<8x64xf32>
    %127 = arith.mulf %116, %126 : vector<8x64xf32>
    %c0_59 = arith.constant 0 : index
    %c0_60 = arith.constant 0 : index
    %c0_61 = arith.constant 0 : index
    %128 = vector.load %arg13[%c0_59, %c0_60, %c0_61] : memref<2x64x32xf32, #tpu.memory_space<vmem>>, vector<1x64x32xf32>
    %129 = vector.shape_cast %128 : vector<1x64x32xf32> to vector<64x32xf32>
    %cst_62 = arith.constant dense<0.000000e+00> : vector<8x32xf32>
    %130 = tpu.matmul %127, %129, %cst_62 {dimension_numbers = #tpu.dot_dimension_numbers<[1], [0], [0], [1], [0, 0, 1, 1], [], []>} : vector<8x64xf32>, vector<64x32xf32>, vector<8x32xf32> -> vector<8x32xf32>
    %c0_63 = arith.constant 0 : index
    %c0_64 = arith.constant 0 : index
    %c0_65 = arith.constant 0 : index
    %131 = vector.load %arg14[%c0_63, %c0_64, %c0_65] : memref<2x1x32xf32, #tpu.memory_space<vmem>>, vector<1x1x32xf32>
    %132 = vector.shape_cast %131 : vector<1x1x32xf32> to vector<1x32xf32>
    %133 = vector.broadcast %132 : vector<1x32xf32> to vector<8x32xf32>
    %134 = arith.addf %130, %133 : vector<8x32xf32>
    %135 = arith.addf %134, %107 : vector<8x32xf32>
    %c0_66 = arith.constant 0 : index
    %c0_67 = arith.constant 0 : index
    %c0_68 = arith.constant 0 : index
    %136 = vector.load %arg15[%c0_66, %c0_67, %c0_68] : memref<2x1x32xf32, #tpu.memory_space<vmem>>, vector<1x1x32xf32>
    %137 = vector.shape_cast %136 : vector<1x1x32xf32> to vector<1x32xf32>
    %c0_69 = arith.constant 0 : index
    %c0_70 = arith.constant 0 : index
    %c0_71 = arith.constant 0 : index
    %138 = vector.load %arg16[%c0_69, %c0_70, %c0_71] : memref<2x1x32xf32, #tpu.memory_space<vmem>>, vector<1x1x32xf32>
    %139 = vector.shape_cast %138 : vector<1x1x32xf32> to vector<1x32xf32>
    %cst_72 = arith.constant dense<0.000000e+00> : vector<8xf32>
    %140 = vector.multi_reduction <add>, %135, %cst_72 [1] : vector<8x32xf32> to vector<8xf32>
    %141 = vector.shape_cast %140 : vector<8xf32> to vector<8x1xf32>
    %cst_73 = arith.constant 3.200000e+01 : f32
    %142 = vector.broadcast %cst_73 : f32 to vector<8x1xf32>
    %143 = arith.divf %141, %142 : vector<8x1xf32>
    %144 = vector.broadcast %143 : vector<8x1xf32> to vector<8x32xf32>
    %145 = arith.subf %135, %144 : vector<8x32xf32>
    %146 = arith.mulf %145, %145 : vector<8x32xf32>
    %cst_74 = arith.constant dense<0.000000e+00> : vector<8xf32>
    %147 = vector.multi_reduction <add>, %146, %cst_74 [1] : vector<8x32xf32> to vector<8xf32>
    %148 = vector.shape_cast %147 : vector<8xf32> to vector<8x1xf32>
    %cst_75 = arith.constant 3.200000e+01 : f32
    %149 = vector.broadcast %cst_75 : f32 to vector<8x1xf32>
    %150 = arith.divf %148, %149 : vector<8x1xf32>
    %151 = vector.broadcast %143 : vector<8x1xf32> to vector<8x32xf32>
    %152 = arith.subf %135, %151 : vector<8x32xf32>
    %cst_76 = arith.constant 9.99999974E-6 : f32
    %153 = vector.broadcast %cst_76 : f32 to vector<8x1xf32>
    %154 = arith.addf %150, %153 : vector<8x1xf32>
    %155 = math.rsqrt %154 : vector<8x1xf32>
    %156 = vector.broadcast %155 : vector<8x1xf32> to vector<8x32xf32>
    %157 = arith.mulf %152, %156 : vector<8x32xf32>
    %158 = vector.broadcast %137 : vector<1x32xf32> to vector<8x32xf32>
    %159 = arith.mulf %157, %158 : vector<8x32xf32>
    %160 = vector.broadcast %139 : vector<1x32xf32> to vector<8x32xf32>
    %161 = arith.addf %159, %160 : vector<8x32xf32>
    %c1 = arith.constant 1 : index
    %c0_77 = arith.constant 0 : index
    %c0_78 = arith.constant 0 : index
    %162 = vector.load %arg5[%c1, %c0_77, %c0_78] : memref<2x32x96xf32, #tpu.memory_space<vmem>>, vector<1x32x96xf32>
    %163 = vector.shape_cast %162 : vector<1x32x96xf32> to vector<32x96xf32>
    %cst_79 = arith.constant dense<0.000000e+00> : vector<8x96xf32>
    %164 = tpu.matmul %161, %163, %cst_79 {dimension_numbers = #tpu.dot_dimension_numbers<[1], [0], [0], [1], [0, 0, 1, 1], [], []>} : vector<8x32xf32>, vector<32x96xf32>, vector<8x96xf32> -> vector<8x96xf32>
    %c1_80 = arith.constant 1 : index
    %c0_81 = arith.constant 0 : index
    %c0_82 = arith.constant 0 : index
    %165 = vector.load %arg6[%c1_80, %c0_81, %c0_82] : memref<2x1x96xf32, #tpu.memory_space<vmem>>, vector<1x1x96xf32>
    %166 = vector.shape_cast %165 : vector<1x1x96xf32> to vector<1x96xf32>
    %167 = vector.broadcast %166 : vector<1x96xf32> to vector<8x96xf32>
    %168 = arith.addf %164, %167 : vector<8x96xf32>
    %169 = vector.extract_strided_slice %168 {offsets = [0, 0], sizes = [8, 16], strides = [1, 1]} : vector<8x96xf32> to vector<8x16xf32>
    %170 = vector.extract_strided_slice %168 {offsets = [0, 32], sizes = [8, 16], strides = [1, 1]} : vector<8x96xf32> to vector<8x16xf32>
    %171 = vector.extract_strided_slice %168 {offsets = [0, 64], sizes = [8, 16], strides = [1, 1]} : vector<8x96xf32> to vector<8x16xf32>
    %cst_83 = arith.constant dense<0.000000e+00> : vector<8x8xf32>
    %172 = tpu.matmul %169, %170, %cst_83 {dimension_numbers = #tpu.dot_dimension_numbers<[1], [1], [0], [0], [0, 0, 1, 0], [], []>} : vector<8x16xf32>, vector<8x16xf32>, vector<8x8xf32> -> vector<8x8xf32>
    %cst_84 = arith.constant 2.500000e-01 : f32
    %173 = vector.broadcast %cst_84 : f32 to vector<8x8xf32>
    %174 = arith.mulf %172, %173 : vector<8x8xf32>
    %175 = vector.broadcast %3 : vector<1x8xf32> to vector<8x8xf32>
    %176 = arith.addf %174, %175 : vector<8x8xf32>
    %cst_85 = arith.constant dense<0xFF800000> : vector<8xf32>
    %177 = vector.multi_reduction <maximumf>, %176, %cst_85 [1] : vector<8x8xf32> to vector<8xf32>
    %178 = vector.shape_cast %177 : vector<8xf32> to vector<8x1xf32>
    %179 = vector.broadcast %178 : vector<8x1xf32> to vector<8x8xf32>
    %180 = arith.subf %176, %179 : vector<8x8xf32>
    %181 = math.exp %180 : vector<8x8xf32>
    %cst_86 = arith.constant dense<0.000000e+00> : vector<8xf32>
    %182 = vector.multi_reduction <add>, %181, %cst_86 [1] : vector<8x8xf32> to vector<8xf32>
    %183 = vector.shape_cast %182 : vector<8xf32> to vector<8x1xf32>
    %184 = tpu.reciprocal %183 {approx = true} : vector<8x1xf32> -> vector<8x1xf32>
    %185 = vector.broadcast %184 : vector<8x1xf32> to vector<8x8xf32>
    %186 = arith.mulf %181, %185 : vector<8x8xf32>
    %cst_87 = arith.constant dense<0.000000e+00> : vector<8x16xf32>
    %187 = tpu.matmul %186, %171, %cst_87 {dimension_numbers = #tpu.dot_dimension_numbers<[1], [0], [0], [1], [0, 0, 1, 1], [], []>} : vector<8x8xf32>, vector<8x16xf32>, vector<8x16xf32> -> vector<8x16xf32>
    %188 = vector.extract_strided_slice %168 {offsets = [0, 16], sizes = [8, 16], strides = [1, 1]} : vector<8x96xf32> to vector<8x16xf32>
    %189 = vector.extract_strided_slice %168 {offsets = [0, 48], sizes = [8, 16], strides = [1, 1]} : vector<8x96xf32> to vector<8x16xf32>
    %190 = vector.extract_strided_slice %168 {offsets = [0, 80], sizes = [8, 16], strides = [1, 1]} : vector<8x96xf32> to vector<8x16xf32>
    %cst_88 = arith.constant dense<0.000000e+00> : vector<8x8xf32>
    %191 = tpu.matmul %188, %189, %cst_88 {dimension_numbers = #tpu.dot_dimension_numbers<[1], [1], [0], [0], [0, 0, 1, 0], [], []>} : vector<8x16xf32>, vector<8x16xf32>, vector<8x8xf32> -> vector<8x8xf32>
    %cst_89 = arith.constant 2.500000e-01 : f32
    %192 = vector.broadcast %cst_89 : f32 to vector<8x8xf32>
    %193 = arith.mulf %191, %192 : vector<8x8xf32>
    %194 = vector.broadcast %3 : vector<1x8xf32> to vector<8x8xf32>
    %195 = arith.addf %193, %194 : vector<8x8xf32>
    %cst_90 = arith.constant dense<0xFF800000> : vector<8xf32>
    %196 = vector.multi_reduction <maximumf>, %195, %cst_90 [1] : vector<8x8xf32> to vector<8xf32>
    %197 = vector.shape_cast %196 : vector<8xf32> to vector<8x1xf32>
    %198 = vector.broadcast %197 : vector<8x1xf32> to vector<8x8xf32>
    %199 = arith.subf %195, %198 : vector<8x8xf32>
    %200 = math.exp %199 : vector<8x8xf32>
    %cst_91 = arith.constant dense<0.000000e+00> : vector<8xf32>
    %201 = vector.multi_reduction <add>, %200, %cst_91 [1] : vector<8x8xf32> to vector<8xf32>
    %202 = vector.shape_cast %201 : vector<8xf32> to vector<8x1xf32>
    %203 = tpu.reciprocal %202 {approx = true} : vector<8x1xf32> -> vector<8x1xf32>
    %204 = vector.broadcast %203 : vector<8x1xf32> to vector<8x8xf32>
    %205 = arith.mulf %200, %204 : vector<8x8xf32>
    %cst_92 = arith.constant dense<0.000000e+00> : vector<8x16xf32>
    %206 = tpu.matmul %205, %190, %cst_92 {dimension_numbers = #tpu.dot_dimension_numbers<[1], [0], [0], [1], [0, 0, 1, 1], [], []>} : vector<8x8xf32>, vector<8x16xf32>, vector<8x16xf32> -> vector<8x16xf32>
    %207 = tpu.concatenate %187, %206 in 1 : vector<8x16xf32>, vector<8x16xf32> -> vector<8x32xf32>
    %c1_93 = arith.constant 1 : index
    %c0_94 = arith.constant 0 : index
    %c0_95 = arith.constant 0 : index
    %208 = vector.load %arg7[%c1_93, %c0_94, %c0_95] : memref<2x32x32xf32, #tpu.memory_space<vmem>>, vector<1x32x32xf32>
    %209 = vector.shape_cast %208 : vector<1x32x32xf32> to vector<32x32xf32>
    %cst_96 = arith.constant dense<0.000000e+00> : vector<8x32xf32>
    %210 = tpu.matmul %207, %209, %cst_96 {dimension_numbers = #tpu.dot_dimension_numbers<[1], [0], [0], [1], [0, 0, 1, 1], [], []>} : vector<8x32xf32>, vector<32x32xf32>, vector<8x32xf32> -> vector<8x32xf32>
    %c1_97 = arith.constant 1 : index
    %c0_98 = arith.constant 0 : index
    %c0_99 = arith.constant 0 : index
    %211 = vector.load %arg8[%c1_97, %c0_98, %c0_99] : memref<2x1x32xf32, #tpu.memory_space<vmem>>, vector<1x1x32xf32>
    %212 = vector.shape_cast %211 : vector<1x1x32xf32> to vector<1x32xf32>
    %213 = vector.broadcast %212 : vector<1x32xf32> to vector<8x32xf32>
    %214 = arith.addf %210, %213 : vector<8x32xf32>
    %215 = arith.addf %214, %161 : vector<8x32xf32>
    %c1_100 = arith.constant 1 : index
    %c0_101 = arith.constant 0 : index
    %c0_102 = arith.constant 0 : index
    %216 = vector.load %arg9[%c1_100, %c0_101, %c0_102] : memref<2x1x32xf32, #tpu.memory_space<vmem>>, vector<1x1x32xf32>
    %217 = vector.shape_cast %216 : vector<1x1x32xf32> to vector<1x32xf32>
    %c1_103 = arith.constant 1 : index
    %c0_104 = arith.constant 0 : index
    %c0_105 = arith.constant 0 : index
    %218 = vector.load %arg10[%c1_103, %c0_104, %c0_105] : memref<2x1x32xf32, #tpu.memory_space<vmem>>, vector<1x1x32xf32>
    %219 = vector.shape_cast %218 : vector<1x1x32xf32> to vector<1x32xf32>
    %cst_106 = arith.constant dense<0.000000e+00> : vector<8xf32>
    %220 = vector.multi_reduction <add>, %215, %cst_106 [1] : vector<8x32xf32> to vector<8xf32>
    %221 = vector.shape_cast %220 : vector<8xf32> to vector<8x1xf32>
    %cst_107 = arith.constant 3.200000e+01 : f32
    %222 = vector.broadcast %cst_107 : f32 to vector<8x1xf32>
    %223 = arith.divf %221, %222 : vector<8x1xf32>
    %224 = vector.broadcast %223 : vector<8x1xf32> to vector<8x32xf32>
    %225 = arith.subf %215, %224 : vector<8x32xf32>
    %226 = arith.mulf %225, %225 : vector<8x32xf32>
    %cst_108 = arith.constant dense<0.000000e+00> : vector<8xf32>
    %227 = vector.multi_reduction <add>, %226, %cst_108 [1] : vector<8x32xf32> to vector<8xf32>
    %228 = vector.shape_cast %227 : vector<8xf32> to vector<8x1xf32>
    %cst_109 = arith.constant 3.200000e+01 : f32
    %229 = vector.broadcast %cst_109 : f32 to vector<8x1xf32>
    %230 = arith.divf %228, %229 : vector<8x1xf32>
    %231 = vector.broadcast %223 : vector<8x1xf32> to vector<8x32xf32>
    %232 = arith.subf %215, %231 : vector<8x32xf32>
    %cst_110 = arith.constant 9.99999974E-6 : f32
    %233 = vector.broadcast %cst_110 : f32 to vector<8x1xf32>
    %234 = arith.addf %230, %233 : vector<8x1xf32>
    %235 = math.rsqrt %234 : vector<8x1xf32>
    %236 = vector.broadcast %235 : vector<8x1xf32> to vector<8x32xf32>
    %237 = arith.mulf %232, %236 : vector<8x32xf32>
    %238 = vector.broadcast %217 : vector<1x32xf32> to vector<8x32xf32>
    %239 = arith.mulf %237, %238 : vector<8x32xf32>
    %240 = vector.broadcast %219 : vector<1x32xf32> to vector<8x32xf32>
    %241 = arith.addf %239, %240 : vector<8x32xf32>
    %c1_111 = arith.constant 1 : index
    %c0_112 = arith.constant 0 : index
    %c0_113 = arith.constant 0 : index
    %242 = vector.load %arg11[%c1_111, %c0_112, %c0_113] : memref<2x32x64xf32, #tpu.memory_space<vmem>>, vector<1x32x64xf32>
    %243 = vector.shape_cast %242 : vector<1x32x64xf32> to vector<32x64xf32>
    %cst_114 = arith.constant dense<0.000000e+00> : vector<8x64xf32>
    %244 = tpu.matmul %241, %243, %cst_114 {dimension_numbers = #tpu.dot_dimension_numbers<[1], [0], [0], [1], [0, 0, 1, 1], [], []>} : vector<8x32xf32>, vector<32x64xf32>, vector<8x64xf32> -> vector<8x64xf32>
    %c1_115 = arith.constant 1 : index
    %c0_116 = arith.constant 0 : index
    %c0_117 = arith.constant 0 : index
    %245 = vector.load %arg12[%c1_115, %c0_116, %c0_117] : memref<2x1x64xf32, #tpu.memory_space<vmem>>, vector<1x1x64xf32>
    %246 = vector.shape_cast %245 : vector<1x1x64xf32> to vector<1x64xf32>
    %247 = vector.broadcast %246 : vector<1x64xf32> to vector<8x64xf32>
    %248 = arith.addf %244, %247 : vector<8x64xf32>
    %cst_118 = arith.constant 5.000000e-01 : f32
    %249 = vector.broadcast %cst_118 : f32 to vector<8x64xf32>
    %250 = arith.mulf %249, %248 : vector<8x64xf32>
    %cst_119 = arith.constant 4.471500e-02 : f32
    %251 = vector.broadcast %cst_119 : f32 to vector<8x64xf32>
    %252 = arith.mulf %251, %248 : vector<8x64xf32>
    %253 = arith.mulf %252, %248 : vector<8x64xf32>
    %254 = arith.mulf %253, %248 : vector<8x64xf32>
    %255 = arith.addf %248, %254 : vector<8x64xf32>
    %cst_120 = arith.constant 0.797884583 : f32
    %256 = vector.broadcast %cst_120 : f32 to vector<8x64xf32>
    %257 = arith.mulf %256, %255 : vector<8x64xf32>
    %258 = math.tanh %257 : vector<8x64xf32>
    %cst_121 = arith.constant 1.000000e+00 : f32
    %259 = vector.broadcast %cst_121 : f32 to vector<8x64xf32>
    %260 = arith.addf %259, %258 : vector<8x64xf32>
    %261 = arith.mulf %250, %260 : vector<8x64xf32>
    %c1_122 = arith.constant 1 : index
    %c0_123 = arith.constant 0 : index
    %c0_124 = arith.constant 0 : index
    %262 = vector.load %arg13[%c1_122, %c0_123, %c0_124] : memref<2x64x32xf32, #tpu.memory_space<vmem>>, vector<1x64x32xf32>
    %263 = vector.shape_cast %262 : vector<1x64x32xf32> to vector<64x32xf32>
    %cst_125 = arith.constant dense<0.000000e+00> : vector<8x32xf32>
    %264 = tpu.matmul %261, %263, %cst_125 {dimension_numbers = #tpu.dot_dimension_numbers<[1], [0], [0], [1], [0, 0, 1, 1], [], []>} : vector<8x64xf32>, vector<64x32xf32>, vector<8x32xf32> -> vector<8x32xf32>
    %c1_126 = arith.constant 1 : index
    %c0_127 = arith.constant 0 : index
    %c0_128 = arith.constant 0 : index
    %265 = vector.load %arg14[%c1_126, %c0_127, %c0_128] : memref<2x1x32xf32, #tpu.memory_space<vmem>>, vector<1x1x32xf32>
    %266 = vector.shape_cast %265 : vector<1x1x32xf32> to vector<1x32xf32>
    %267 = vector.broadcast %266 : vector<1x32xf32> to vector<8x32xf32>
    %268 = arith.addf %264, %267 : vector<8x32xf32>
    %269 = arith.addf %268, %241 : vector<8x32xf32>
    %c1_129 = arith.constant 1 : index
    %c0_130 = arith.constant 0 : index
    %c0_131 = arith.constant 0 : index
    %270 = vector.load %arg15[%c1_129, %c0_130, %c0_131] : memref<2x1x32xf32, #tpu.memory_space<vmem>>, vector<1x1x32xf32>
    %271 = vector.shape_cast %270 : vector<1x1x32xf32> to vector<1x32xf32>
    %c1_132 = arith.constant 1 : index
    %c0_133 = arith.constant 0 : index
    %c0_134 = arith.constant 0 : index
    %272 = vector.load %arg16[%c1_132, %c0_133, %c0_134] : memref<2x1x32xf32, #tpu.memory_space<vmem>>, vector<1x1x32xf32>
    %273 = vector.shape_cast %272 : vector<1x1x32xf32> to vector<1x32xf32>
    %cst_135 = arith.constant dense<0.000000e+00> : vector<8xf32>
    %274 = vector.multi_reduction <add>, %269, %cst_135 [1] : vector<8x32xf32> to vector<8xf32>
    %275 = vector.shape_cast %274 : vector<8xf32> to vector<8x1xf32>
    %cst_136 = arith.constant 3.200000e+01 : f32
    %276 = vector.broadcast %cst_136 : f32 to vector<8x1xf32>
    %277 = arith.divf %275, %276 : vector<8x1xf32>
    %278 = vector.broadcast %277 : vector<8x1xf32> to vector<8x32xf32>
    %279 = arith.subf %269, %278 : vector<8x32xf32>
    %280 = arith.mulf %279, %279 : vector<8x32xf32>
    %cst_137 = arith.constant dense<0.000000e+00> : vector<8xf32>
    %281 = vector.multi_reduction <add>, %280, %cst_137 [1] : vector<8x32xf32> to vector<8xf32>
    %282 = vector.shape_cast %281 : vector<8xf32> to vector<8x1xf32>
    %cst_138 = arith.constant 3.200000e+01 : f32
    %283 = vector.broadcast %cst_138 : f32 to vector<8x1xf32>
    %284 = arith.divf %282, %283 : vector<8x1xf32>
    %285 = vector.broadcast %277 : vector<8x1xf32> to vector<8x32xf32>
    %286 = arith.subf %269, %285 : vector<8x32xf32>
    %cst_139 = arith.constant 9.99999974E-6 : f32
    %287 = vector.broadcast %cst_139 : f32 to vector<8x1xf32>
    %288 = arith.addf %284, %287 : vector<8x1xf32>
    %289 = math.rsqrt %288 : vector<8x1xf32>
    %290 = vector.broadcast %289 : vector<8x1xf32> to vector<8x32xf32>
    %291 = arith.mulf %286, %290 : vector<8x32xf32>
    %292 = vector.broadcast %271 : vector<1x32xf32> to vector<8x32xf32>
    %293 = arith.mulf %291, %292 : vector<8x32xf32>
    %294 = vector.broadcast %273 : vector<1x32xf32> to vector<8x32xf32>
    %295 = arith.addf %293, %294 : vector<8x32xf32>
    %c0_140 = arith.constant 0 : index
    %c0_141 = arith.constant 0 : index
    %296 = vector.load %arg17[%c0_140, %c0_141] : memref<32x32xf32, #tpu.memory_space<vmem>>, vector<32x32xf32>
    %cst_142 = arith.constant dense<0.000000e+00> : vector<8x32xf32>
    %297 = tpu.matmul %295, %296, %cst_142 {dimension_numbers = #tpu.dot_dimension_numbers<[1], [0], [0], [1], [0, 0, 1, 1], [], []>} : vector<8x32xf32>, vector<32x32xf32>, vector<8x32xf32> -> vector<8x32xf32>
    %c0_143 = arith.constant 0 : index
    %c0_144 = arith.constant 0 : index
    %298 = vector.load %arg18[%c0_143, %c0_144] : memref<1x32xf32, #tpu.memory_space<vmem>>, vector<1x32xf32>
    %299 = vector.broadcast %298 : vector<1x32xf32> to vector<8x32xf32>
    %300 = arith.addf %297, %299 : vector<8x32xf32>
    %301 = math.tanh %300 : vector<8x32xf32>
    %c0_145 = arith.constant 0 : index
    %c0_146 = arith.constant 0 : index
    %302 = vector.load %arg19[%c0_145, %c0_146] : memref<32x16xf32, #tpu.memory_space<vmem>>, vector<32x16xf32>
    %cst_147 = arith.constant dense<0.000000e+00> : vector<8x16xf32>
    %303 = tpu.matmul %301, %302, %cst_147 {dimension_numbers = #tpu.dot_dimension_numbers<[1], [0], [0], [1], [0, 0, 1, 1], [], []>} : vector<8x32xf32>, vector<32x16xf32>, vector<8x16xf32> -> vector<8x16xf32>
    %c0_148 = arith.constant 0 : index
    %c0_149 = arith.constant 0 : index
    %304 = vector.load %arg20[%c0_148, %c0_149] : memref<1x16xf32, #tpu.memory_space<vmem>>, vector<1x16xf32>
    %305 = vector.broadcast %304 : vector<1x16xf32> to vector<8x16xf32>
    %306 = arith.addf %303, %305 : vector<8x16xf32>
    %c0_150 = arith.constant 0 : index
    %c0_151 = arith.constant 0 : index
    %307 = vector.load %arg21[%c0_150, %c0_151] : memref<16x128xf32, #tpu.memory_space<vmem>>, vector<16x128xf32>
    %cst_152 = arith.constant dense<0.000000e+00> : vector<8x128xf32>
    %308 = tpu.matmul %306, %307, %cst_152 {dimension_numbers = #tpu.dot_dimension_numbers<[1], [0], [0], [1], [0, 0, 1, 1], [], []>} : vector<8x16xf32>, vector<16x128xf32>, vector<8x128xf32> -> vector<8x128xf32>
    %c0_153 = arith.constant 0 : index
    %c0_154 = arith.constant 0 : index
    %309 = vector.load %arg22[%c0_153, %c0_154] : memref<1x128xf32, #tpu.memory_space<vmem>>, vector<1x128xf32>
    %310 = vector.broadcast %309 : vector<1x128xf32> to vector<8x128xf32>
    %311 = arith.addf %308, %310 : vector<8x128xf32>
    %c0_155 = arith.constant 0 : index
    %c0_156 = arith.constant 0 : index
    %312 = vector.load %arg23[%c0_155, %c0_156] : memref<8x128xf32, #tpu.memory_space<vmem>>, vector<8x128xf32>
    tpu.vector_store %arg23[%c0_155, %c0_156], %311 {strides = array<i32>} : memref<8x128xf32, #tpu.memory_space<vmem>>, vector<8x128xf32>,
    return
  }
  func.func @transform_0(%arg0: i32) -> (i32, i32, i32) {
    %c0_i32 = arith.constant 0 : i32
    %c0_i32_0 = arith.constant 0 : i32
    %c0_i32_1 = arith.constant 0 : i32
    return %arg0, %c0_i32, %c0_i32_0 : i32, i32, i32
  }
  func.func @transform_1(%arg0: i32) -> (i32, i32, i32) {
    %c0_i32 = arith.constant 0 : i32
    %c0_i32_0 = arith.constant 0 : i32
    %c0_i32_1 = arith.constant 0 : i32
    return %arg0, %c0_i32, %c0_i32_0 : i32, i32, i32
  }
  func.func @transform_2(%arg0: i32) -> (i32, i32) {
    %c0_i32 = arith.constant 0 : i32
    %c0_i32_0 = arith.constant 0 : i32
    %c0_i32_1 = arith.constant 0 : i32
    return %c0_i32, %c0_i32_0 : i32, i32
  }
  func.func @transform_3(%arg0: i32) -> (i32, i32) {
    %c0_i32 = arith.constant 0 : i32
    %c0_i32_0 = arith.constant 0 : i32
    %c0_i32_1 = arith.constant 0 : i32
    return %c0_i32, %c0_i32_0 : i32, i32
  }
  func.func @transform_4(%arg0: i32) -> (i32, i32, i32) {
    %c0_i32 = arith.constant 0 : i32
    %c0_i32_0 = arith.constant 0 : i32
    %c0_i32_1 = arith.constant 0 : i32
    %c0_i32_2 = arith.constant 0 : i32
    return %c0_i32, %c0_i32_0, %c0_i32_1 : i32, i32, i32
  }
  func.func @transform_5(%arg0: i32) -> (i32, i32, i32) {
    %c0_i32 = arith.constant 0 : i32
    %c0_i32_0 = arith.constant 0 : i32
    %c0_i32_1 = arith.constant 0 : i32
    %c0_i32_2 = arith.constant 0 : i32
    return %c0_i32, %c0_i32_0, %c0_i32_1 : i32, i32, i32
  }
  func.func @transform_6(%arg0: i32) -> (i32, i32, i32) {
    %c0_i32 = arith.constant 0 : i32
    %c0_i32_0 = arith.constant 0 : i32
    %c0_i32_1 = arith.constant 0 : i32
    %c0_i32_2 = arith.constant 0 : i32
    return %c0_i32, %c0_i32_0, %c0_i32_1 : i32, i32, i32
  }
  func.func @transform_7(%arg0: i32) -> (i32, i32, i32) {
    %c0_i32 = arith.constant 0 : i32
    %c0_i32_0 = arith.constant 0 : i32
    %c0_i32_1 = arith.constant 0 : i32
    %c0_i32_2 = arith.constant 0 : i32
    return %c0_i32, %c0_i32_0, %c0_i32_1 : i32, i32, i32
  }
  func.func @transform_8(%arg0: i32) -> (i32, i32, i32) {
    %c0_i32 = arith.constant 0 : i32
    %c0_i32_0 = arith.constant 0 : i32
    %c0_i32_1 = arith.constant 0 : i32
    %c0_i32_2 = arith.constant 0 : i32
    return %c0_i32, %c0_i32_0, %c0_i32_1 : i32, i32, i32
  }
  func.func @transform_9(%arg0: i32) -> (i32, i32, i32) {
    %c0_i32 = arith.constant 0 : i32
    %c0_i32_0 = arith.constant 0 : i32
    %c0_i32_1 = arith.constant 0 : i32
    %c0_i32_2 = arith.constant 0 : i32
    return %c0_i32, %c0_i32_0, %c0_i32_1 : i32, i32, i32
  }
  func.func @transform_10(%arg0: i32) -> (i32, i32, i32) {
    %c0_i32 = arith.constant 0 : i32
    %c0_i32_0 = arith.constant 0 : i32
    %c0_i32_1 = arith.constant 0 : i32
    %c0_i32_2 = arith.constant 0 : i32
    return %c0_i32, %c0_i32_0, %c0_i32_1 : i32, i32, i32
  }
  func.func @transform_11(%arg0: i32) -> (i32, i32, i32) {
    %c0_i32 = arith.constant 0 : i32
    %c0_i32_0 = arith.constant 0 : i32
    %c0_i32_1 = arith.constant 0 : i32
    %c0_i32_2 = arith.constant 0 : i32
    return %c0_i32, %c0_i32_0, %c0_i32_1 : i32, i32, i32
  }
  func.func @transform_12(%arg0: i32) -> (i32, i32, i32) {
    %c0_i32 = arith.constant 0 : i32
    %c0_i32_0 = arith.constant 0 : i32
    %c0_i32_1 = arith.constant 0 : i32
    %c0_i32_2 = arith.constant 0 : i32
    return %c0_i32, %c0_i32_0, %c0_i32_1 : i32, i32, i32
  }
  func.func @transform_13(%arg0: i32) -> (i32, i32, i32) {
    %c0_i32 = arith.constant 0 : i32
    %c0_i32_0 = arith.constant 0 : i32
    %c0_i32_1 = arith.constant 0 : i32
    %c0_i32_2 = arith.constant 0 : i32
    return %c0_i32, %c0_i32_0, %c0_i32_1 : i32, i32, i32
  }
  func.func @transform_14(%arg0: i32) -> (i32, i32, i32) {
    %c0_i32 = arith.constant 0 : i32
    %c0_i32_0 = arith.constant 0 : i32
    %c0_i32_1 = arith.constant 0 : i32
    %c0_i32_2 = arith.constant 0 : i32
    return %c0_i32, %c0_i32_0, %c0_i32_1 : i32, i32, i32
  }
  func.func @transform_15(%arg0: i32) -> (i32, i32, i32) {
    %c0_i32 = arith.constant 0 : i32
    %c0_i32_0 = arith.constant 0 : i32
    %c0_i32_1 = arith.constant 0 : i32
    %c0_i32_2 = arith.constant 0 : i32
    return %c0_i32, %c0_i32_0, %c0_i32_1 : i32, i32, i32
  }
  func.func @transform_16(%arg0: i32) -> (i32, i32) {
    %c0_i32 = arith.constant 0 : i32
    %c0_i32_0 = arith.constant 0 : i32
    %c0_i32_1 = arith.constant 0 : i32
    return %c0_i32, %c0_i32_0 : i32, i32
  }
  func.func @transform_17(%arg0: i32) -> (i32, i32) {
    %c0_i32 = arith.constant 0 : i32
    %c0_i32_0 = arith.constant 0 : i32
    %c0_i32_1 = arith.constant 0 : i32
    return %c0_i32, %c0_i32_0 : i32, i32
  }
  func.func @transform_18(%arg0: i32) -> (i32, i32) {
    %c0_i32 = arith.constant 0 : i32
    %c0_i32_0 = arith.constant 0 : i32
    %c0_i32_1 = arith.constant 0 : i32
    return %c0_i32, %c0_i32_0 : i32, i32
  }
  func.func @transform_19(%arg0: i32) -> (i32, i32) {
    %c0_i32 = arith.constant 0 : i32
    %c0_i32_0 = arith.constant 0 : i32
    %c0_i32_1 = arith.constant 0 : i32
    return %c0_i32, %c0_i32_0 : i32, i32
  }
  func.func @transform_20(%arg0: i32) -> (i32, i32) {
    %c0_i32 = arith.constant 0 : i32
    %c0_i32_0 = arith.constant 0 : i32
    %c0_i32_1 = arith.constant 0 : i32
    return %c0_i32, %c0_i32_0 : i32, i32
  }
  func.func @transform_21(%arg0: i32) -> (i32, i32) {
    %c0_i32 = arith.constant 0 : i32
    %c0_i32_0 = arith.constant 0 : i32
    %c0_i32_1 = arith.constant 0 : i32
    return %c0_i32, %c0_i32_0 : i32, i32
  }
  func.func @transform_22(%arg0: i32) -> (i32, i32) {
    %c0_i32 = arith.constant 0 : i32
    %c0_i32_0 = arith.constant 0 : i32
    return %arg0, %c0_i32 : i32, i32
  }
}

</mosaic_0001>

<bundles_post_ra>
// kernel: tpu_custom_call.1
= control target key start
LH: loop header
LB: loop body
LE: loop exit
PB: predicated region body
PF: predicated region fallthrough
CT: control target
= control target key end

     0   :  { %s4899_s0 = inlined_call_operand.hbm [shape: f32[2,8,32], index: 0, kind: input, shape index: {}]   ;;  %s4900_s1 = inlined_call_operand.hbm [shape: f32[2,1,8], index: 1, kind: input, shape index: {}]   ;;  %s4901_s2 = inlined_call_operand.hbm [shape: f32[1,32], index: 2, kind: input, shape index: {}]   ;;  %s4902_s3 = inlined_call_operand.hbm [shape: f32[1,32], index: 3, kind: input, shape index: {}]   ;;  %s4903_s4 = inlined_call_operand.vmem [shape: f32[2,32,96], index: 4, kind: input, shape index: {}]   ;;  %s4904_s5 = inlined_call_operand.hbm [shape: f32[2,1,96], index: 5, kind: input, shape index: {}]   ;;  %s4905_s6 = inlined_call_operand.vmem [shape: f32[2,32,32], index: 6, kind: input, shape index: {}]   ;;  %s4906_s7 = inlined_call_operand.hbm [shape: f32[2,1,32], index: 7, kind: input, shape index: {}]   ;;  %s4907_s8 = inlined_call_operand.hbm [shape: f32[2,1,32], index: 8, kind: input, shape index: {}]   ;;  %s4908_s9 = inlined_call_operand.hbm [shape: f32[2,1,32], index: 9, kind: input, shape index: {}]   ;;  %s4909_s10 = inlined_call_operand.vmem [shape: f32[2,32,64], index: 10, kind: input, shape index: {}]   ;;  %s4910_s11 = inlined_call_operand.hbm [shape: f32[2,1,64], index: 11, kind: input, shape index: {}]   ;;  %s4911_s12 = inlined_call_operand.vmem [shape: f32[2,64,32], index: 12, kind: input, shape index: {}]   ;;  %s4912_s13 = inlined_call_operand.hbm [shape: f32[2,1,32], index: 13, kind: input, shape index: {}]   ;;  %s4913_s14 = inlined_call_operand.hbm [shape: f32[2,1,32], index: 14, kind: input, shape index: {}]   ;;  %s4914_s15 = inlined_call_operand.hbm [shape: f32[2,1,32], index: 15, kind: input, shape index: {}]   ;;  %s4915_s16 = inlined_call_operand.hbm [shape: f32[32,32], index: 16, kind: input, shape index: {}]   ;;  %s4916_s17 = inlined_call_operand.hbm [shape: f32[1,32], index: 17, kind: input, shape index: {}]   ;;  %s4917_s18 = inlined_call_operand.vmem [shape: f32[32,16], index: 18, kind: input, shape index: {}]   ;;  %s4918_s19 = inlined_call_operand.hbm [shape: f32[1,16], index: 19, kind: input, shape index: {}]   ;;  %s4919_s20 = inlined_call_operand.hbm [shape: f32[16,128], index: 20, kind: input, shape index: {}]   ;;  %s4920_s21 = inlined_call_operand.vmem [shape: f32[1,128], index: 21, kind: input, shape index: {}]   ;;  %s4921_s22 = inlined_call_operand.hbm [shape: f32[16,128], index: 22, kind: output, shape index: {}]  }
   0x1   :  { %4936 = sst [smem:[#allocation40_spill]] %s4899_s0 }
   0x2   :  { %4937 = sst [smem:[#allocation41_spill]] %s4900_s1 }
   0x3   :  { %4938 = sst [smem:[#allocation42_spill]] %s4901_s2 }
   0x4   :  { %4939 = sst [smem:[#allocation43_spill]] %s4902_s3 }
   0x5   :  { %4940 = sst [smem:[#allocation44_spill]] %s4903_s4 }
   0x6   :  { %4941 = sst [smem:[#allocation45_spill]] %s4904_s5 }
   0x7   :  { %4942 = sst [smem:[#allocation46_spill]] %s4905_s6 }
   0x8   :  { %4943 = sst [smem:[#allocation47_spill]] %s4906_s7 }
   0x9   :  { %4944 = sst [smem:[#allocation48_spill]] %s4907_s8 }
   0xa   :  { %4945 = sst [smem:[#allocation49_spill]] %s4908_s9 }
   0xb   :  { %4946 = sst [smem:[#allocation50_spill]] %s4910_s11 }
   0xc   :  { %4947 = sst [smem:[#allocation51_spill]] %s4911_s12 }
   0xd   :  { %4948 = sst [smem:[#allocation52_spill]] %s4912_s13 }
   0xe   :  { %4949 = sst [smem:[#allocation53_spill]] %s4913_s14 }
   0xf   :  { %4950 = sst [smem:[#allocation54_spill]] %s4914_s15 }
  0x10   :  { %4951 = sst [smem:[#allocation55_spill]] %s4915_s16 }
  0x11   :  { %4952 = sst [smem:[#allocation56_spill]] %s4916_s17 }
  0x12   :  { %4953 = sst [smem:[#allocation57_spill]] %s4917_s18 }
  0x13   :  { %4954 = sst [smem:[#allocation58_spill]] %s4918_s19 }
  0x14   :  { %4955 = sst [smem:[#allocation59_spill]] %s4920_s21 }
  0x15   :  { %4956 = sst [smem:[#allocation60_spill]] %s4921_s22 }
  0x16   :  { %27 = vsyncpa [#allocation3], 0 }
  0x17   :  { %29 = vsyncpa [#allocation3 + $0x1], 0 }
  0x18   :  { %30 = vsyncpa [#allocation6], 0 }
  0x19   :  { %32 = vsyncpa [#allocation6 + $0x1], 0 }
  0x1a   :  { %33 = vsyncpa [#allocation9], 0 }
  0x1b   :  { %34 = vsyncpa [#allocation12], 0 }
  0x1c   :  { %35 = vsyncpa [#allocation15], 0 }
  0x1d   :  { %36 = vsyncpa [#allocation18], 0 }
  0x1e   :  { %37 = vsyncpa [#allocation21], 0 }
  0x1f   :  { %38 = vsyncpa [#allocation24], 0 }
  0x20   :  { %39 = vsyncpa [#allocation27], 0 }
  0x21   :  { %40 = vsyncpa [#allocation4], 0 }
  0x22   :  { %42 = vsyncpa [#allocation4 + $0x1], 0  ;;  %s4223_s3 = smov 0   ;;  %s4225_s28 = smov 0  }
  0x23   :  { %s4227_s29 = smov 0   ;;  %s4229_s30 = smov 0  }
  0x24 LB: > { %s4079_s4 = smov [#allocation7]   ;;  %s4244_s23 = sadd.s32 4294967295, %s4077_s30   ;;  %s4077_s30 = sphi %s4229_s30, %s5014_s30   ;;  %s4073_s29 = sphi %s4227_s29, %s5013_s29   ;;  %s4069_s28 = sphi %s4225_s28, %s5012_s28   ;;  %s4065_s3 = sphi %s4223_s3, %s5011_s3  }
  0x25   : > { %s564_s0 = sshll.u32 %s4079_s4, 4  ;;  %p2966_p0 = scmp.ge.s32.totalorder %s4077_s30, 1  ;;  %s565_s0 = int_to_ptr.vmem [resolvable:$true] %s564_s0 }
  0x26   : > { %p4928_p1 = scmp.eq.s32.totalorder %s4244_s23, 0  ;;  %p551_p2 = scmp.lt.s32.totalorder %s4077_s30, 3 }
  0x27   : > { %s4080_s5 = smov [#allocation8]   ;;  %s4081_s25 = smov [#allocation11]  }
  0x28   : > { %p4249_p3 = pnand %p2966_p0, %p551_p2  ;;  %s575_s24 = sshll.u32 %s4080_s5, 4  ;;  %s576_s24 = int_to_ptr.vmem [resolvable:$true] %s575_s24 }
  0x29   : > { %s604_s26 = sshll.u32 %s4081_s25, 4  ;;  %s3568_s27 = scalar_lea.vmem %s565_s0, 16  ;;  %s4262_s26 = int_to_ptr.vmem [resolvable:$true] %s604_s26 }
  0x2a   : > { %s4957_s1 = scalar_select %p4249_p3, 1, 0 }
  0x2b   : > { %p3383_p5 = pneg %p4249_p3  ;;  %p3569_p8 = scmp.ne.s32.totalorder %s565_s0, %s3568_s27 }
  0x2c   : > { %s3575_s4 = scalar_lea.vmem %s565_s0, 32  ;;  %p3576_p11 = scmp.lt.s32.totalorder %s565_s0, %s565_s0 }
  0x2d   : > { %p4258_p6 = pnand %p3383_p5, %p4928_p1  ;;  %p3577_p12 = scmp.lt.s32.totalorder %s3575_s4, %s3568_s27 }
  0x2f   : > { %p4266_p7 = pneg %p4258_p6  ;;  %p3578_p13 = por %p3577_p12, %p3576_p11 }
  0x31   : > { %p3571_p9 = pnand %p3569_p8, %p4266_p7 }
  0x33   : > { %p3572_p10 = pneg %p3571_p9 }
  0x35   : > { %p3579_p0 = pnand %p3578_p13, %p3572_p10 }
  0x37   : > { %3582 = shalt.err (!%p3579_p0)
}
  0x38   : > { %s4960_s22 = sld [smem:[#allocation42_spill]]  ;;  %s3594_s21 = scalar_lea.vmem %s576_s24, 16 }
  0x39   : > { %p3595_p2 = scmp.ne.s32.totalorder %s576_s24, %s3594_s21  ;;  %s3601_s18 = scalar_lea.vmem %s576_s24, 32 }
  0x3a   : > { %p3602_p8 = scmp.lt.s32.totalorder %s576_s24, %s576_s24  ;;  %p3603_p9 = scmp.lt.s32.totalorder %s3601_s18, %s3594_s21 }
  0x3b   : > { %p3597_p5 = pnand %p3595_p2, %p4266_p7 }
  0x3c   : > { %p3604_p1 = por %p3603_p9, %p3602_p8 }
  0x3d   : > { %p3598_p4 = pneg %p3597_p5 }
  0x3e   : > { %3386 = dma.hbm_to_vmem [thread:$0]  (!%p4258_p6), %s4960_s22, 16, %s565_s0, [#allocation6]  }
  0x3f   : > { %p3605_p3 = pnand %p3604_p1, %p3598_p4 }
  0x41   : > { %3608 = shalt.err (!%p3605_p3)
}
  0x42   : > { %s4961_s12 = sld [smem:[#allocation43_spill]]  ;;  %s3620_s22 = scalar_lea.vmem %s4262_s26, 32 }
  0x43   : > { %p3621_p10 = scmp.ne.s32.totalorder %s4262_s26, %s3620_s22  ;;  %p3628_p13 = scmp.lt.s32.totalorder %s4262_s26, %s4262_s26 }
  0x44   : > { %p3629_p0 = scmp.lt.s32.totalorder %s3620_s22, %s3620_s22 }
  0x45   : > { %p3623_p11 = pnand %p3621_p10, %p4266_p7 }
  0x46   : > { %p3630_p1 = por %p3629_p0, %p3628_p13 }
  0x47   : > { %p3624_p12 = pneg %p3623_p11 }
  0x48   : > { %3389 = dma.hbm_to_vmem [thread:$0]  (!%p4258_p6), %s4961_s12, 16, %s576_s24, [#allocation9]  }
  0x49   : > { %p3631_p3 = pnand %p3630_p1, %p3624_p12 }
  0x4b   : > { %3634 = shalt.err (!%p3631_p3)
}
  0x4c   : > { %s4931_s18 = smov 16   ;;  %s4083_s21 = smov 1  }
  0x4d   : > { %s4962_s7 = sld [smem:[#allocation47_spill]]  ;;  %s4084_s24 = smov [#allocation14]  }
  0x4e   : > { %s630_s5 = sshll.u32 %s4084_s24, 4  ;;  %s4085_s25 = smov [#allocation17]   ;;  %s631_s5 = int_to_ptr.vmem [resolvable:$true] %s630_s5 }
  0x4f   : > { %s662_s27 = sshll.u32 %s4085_s25, 4  ;;  %s3646_s4 = scalar_lea.vmem %s631_s5, 32  ;;  %s663_s27 = int_to_ptr.vmem [resolvable:$true] %s662_s27 }
  0x50   : > { %p3647_p4 = scmp.ne.s32.totalorder %s631_s5, %s3646_s4  ;;  %p3654_p8 = scmp.lt.s32.totalorder %s631_s5, %s631_s5 }
  0x51   : > { %p3655_p9 = scmp.lt.s32.totalorder %s3646_s4, %s3646_s4 }
  0x52   : > { %p3649_p2 = pnand %p3647_p4, %p4266_p7 }
  0x53   : > { %3395 = dma.hbm_to_vmem [thread:$0]  (!%p4258_p6), %s4962_s7, 32, %s4262_s26, [#allocation12], %s4931_s18, %s4931_s18, %s4083_s21  }
  0x54   : > { %p3650_p5 = pneg %p3649_p2  ;;  %p3656_p10 = por %p3655_p9, %p3654_p8 }
  0x56   : > { %p3657_p11 = pnand %p3656_p10, %p3650_p5 }
  0x58   : > { %3660 = shalt.err (!%p3657_p11)
}
  0x59   : > { %s4963_s9 = sld [smem:[#allocation49_spill]]  ;;  %s3672_s12 = scalar_lea.vmem %s663_s27, 32 }
  0x5a   : > { %p3673_p12 = scmp.ne.s32.totalorder %s663_s27, %s3672_s12  ;;  %p3680_p1 = scmp.lt.s32.totalorder %s663_s27, %s663_s27 }
  0x5b   : > { %p3681_p3 = scmp.lt.s32.totalorder %s3672_s12, %s3672_s12 }
  0x5c   : > { %p3675_p13 = pnand %p3673_p12, %p4266_p7 }
  0x5d   : > { %p3682_p4 = por %p3681_p3, %p3680_p1 }
  0x5e   : > { %p3676_p0 = pneg %p3675_p13 }
  0x5f   : > { %3401 = dma.hbm_to_vmem [thread:$0]  (!%p4258_p6), %s4963_s9, 32, %s631_s5, [#allocation15], %s4931_s18, %s4931_s18, %s4083_s21  }
  0x60   : > { %p3683_p2 = pnand %p3682_p4, %p3676_p0 }
  0x62   : > { %3686 = shalt.err (!%p3683_p2)
}
  0x63   : > { %s4964_s13 = sld [smem:[#allocation52_spill]]  ;;  %s4086_s5 = smov [#allocation20]  }
  0x64   : > { %s688_s25 = sshll.u32 %s4086_s5, 4  ;;  %s4087_s4 = smov [#allocation23]   ;;  %s689_s25 = int_to_ptr.vmem [resolvable:$true] %s688_s25 }
  0x65   : > { %s715_s26 = sshll.u32 %s4087_s4, 4  ;;  %s3698_s22 = scalar_lea.vmem %s689_s25, 32  ;;  %s716_s26 = int_to_ptr.vmem [resolvable:$true] %s715_s26 }
  0x66   : > { %p3699_p5 = scmp.ne.s32.totalorder %s689_s25, %s3698_s22  ;;  %p3706_p10 = scmp.lt.s32.totalorder %s689_s25, %s689_s25 }
  0x67   : > { %p3707_p11 = scmp.lt.s32.totalorder %s3698_s22, %s3698_s22 }
  0x68   : > { %p3701_p8 = pnand %p3699_p5, %p4266_p7 }
  0x69   : > { %3407 = dma.hbm_to_vmem [thread:$0]  (!%p4258_p6), %s4964_s13, 32, %s663_s27, [#allocation18], %s4931_s18, %s4931_s18, %s4083_s21  }
  0x6a   : > { %p3702_p9 = pneg %p3701_p8  ;;  %p3708_p12 = por %p3707_p11, %p3706_p10 }
  0x6c   : > { %p3709_p13 = pnand %p3708_p12, %p3702_p9 }
  0x6e   : > { %3712 = shalt.err (!%p3709_p13)
}
  0x6f   : > { %s4965_s15 = sld [smem:[#allocation54_spill]]  ;;  %s3724_s0 = scalar_lea.vmem %s716_s26, 16 }
  0x70   : > { %p3725_p0 = scmp.ne.s32.totalorder %s716_s26, %s3724_s0  ;;  %s3731_s24 = scalar_lea.vmem %s716_s26, 32 }
  0x71   : > { %p3732_p4 = scmp.lt.s32.totalorder %s716_s26, %s716_s26  ;;  %p3733_p2 = scmp.lt.s32.totalorder %s3731_s24, %s3724_s0 }
  0x72   : > { %p3727_p1 = pnand %p3725_p0, %p4266_p7 }
  0x73   : > { %p3734_p5 = por %p3733_p2, %p3732_p4 }
  0x74   : > { %p3728_p3 = pneg %p3727_p1 }
  0x75   : > { %3413 = dma.hbm_to_vmem [thread:$0]  (!%p4258_p6), %s4965_s15, 32, %s689_s25, [#allocation21], %s4931_s18, %s4931_s18, %s4083_s21  }
  0x76   : > { %p3735_p8 = pnand %p3734_p5, %p3728_p3 }
  0x78   : > { %3738 = shalt.err (!%p3735_p8)
}
  0x79   : > { %s4966_s17 = sld [smem:[#allocation56_spill]]  ;;  %s4088_s25 = smov [#allocation10]  }
  0x7a   : > { %s588_s22 = sshll.u32 %s4088_s25, 4  ;;  %s4089_s27 = smov [#allocation13]   ;;  %s589_s22 = int_to_ptr.vmem [resolvable:$true] %s588_s22 }
  0x7b   : > { %s617_s12 = sshll.u32 %s4089_s27, 4  ;;  %s3750_s18 = scalar_lea.vmem %s589_s22, 32  ;;  %s618_s12 = int_to_ptr.vmem [resolvable:$true] %s617_s12 }
  0x7c   : > { %p3751_p9 = scmp.ne.s32.totalorder %s589_s22, %s3750_s18  ;;  %p3758_p12 = scmp.lt.s32.totalorder %s589_s22, %s589_s22 }
  0x7d   : > { %p3759_p13 = scmp.lt.s32.totalorder %s3750_s18, %s3750_s18 }
  0x7e   : > { %p3753_p10 = pnand %p3751_p9, %p4266_p7 }
  0x7f   : > { %3419 = dma.hbm_to_vmem [thread:$0]  (!%p4258_p6), %s4966_s17, 16, %s716_s26, [#allocation24]  }
  0x80   : > { %p3754_p11 = pneg %p3753_p10  ;;  %p3760_p0 = por %p3759_p13, %p3758_p12 }
  0x82   : > { %p3761_p1 = pnand %p3760_p0, %p3754_p11 }
  0x84   : > { %3764 = shalt.err (!%p3761_p1)
}
  0x85   : > { %s4967_s0 = smov 16   ;;  %s4968_s5 = sld [smem:[#allocation45_spill]] }
  0x86   : > { %s3776_s4 = scalar_lea.vmem %s618_s12, 32  ;;  %p3784_p5 = scmp.lt.s32.totalorder %s618_s12, %s618_s12 }
  0x87   : > { %p3777_p3 = scmp.ne.s32.totalorder %s618_s12, %s3776_s4  ;;  %p3785_p8 = scmp.lt.s32.totalorder %s3776_s4, %s3776_s4 }
  0x89   : > { %p3779_p4 = pnand %p3777_p3, %p4266_p7  ;;  %p3786_p9 = por %p3785_p8, %p3784_p5 }
  0x8b   : > { %3392 = dma.hbm_to_vmem [thread:$0]  (!%p4258_p6), %s4968_s5, 32, %s589_s22, [#allocation9], %s4967_s0, %s4967_s0, %s4083_s21  }
  0x8c   : > { %p3780_p2 = pneg %p3779_p4 }
  0x8e   : > { %p3787_p10 = pnand %p3786_p9, %p3780_p2 }
  0x90   : > { %3790 = shalt.err (!%p3787_p10)
}
  0x91   : > { %s4969_s8 = sld [smem:[#allocation48_spill]]  ;;  %s4090_s22 = smov [#allocation16]  }
  0x92   : > { %s646_s27 = sshll.u32 %s4090_s22, 4  ;;  %s4091_s26 = smov [#allocation19]   ;;  %s647_s27 = int_to_ptr.vmem [resolvable:$true] %s646_s27 }
  0x93   : > { %s675_s24 = sshll.u32 %s4091_s26, 4  ;;  %s3802_s5 = scalar_lea.vmem %s647_s27, 32  ;;  %s676_s24 = int_to_ptr.vmem [resolvable:$true] %s675_s24 }
  0x94   : > { %p3803_p11 = scmp.ne.s32.totalorder %s647_s27, %s3802_s5  ;;  %p3810_p0 = scmp.lt.s32.totalorder %s647_s27, %s647_s27 }
  0x95   : > { %p3811_p1 = scmp.lt.s32.totalorder %s3802_s5, %s3802_s5 }
  0x96   : > { %p3805_p12 = pnand %p3803_p11, %p4266_p7 }
  0x97   : > { %3398 = dma.hbm_to_vmem [thread:$0]  (!%p4258_p6), %s4969_s8, 32, %s618_s12, [#allocation12], %s4967_s0, %s4967_s0, %s4083_s21  }
  0x98   : > { %p3806_p13 = pneg %p3805_p12  ;;  %p3812_p3 = por %p3811_p1, %p3810_p0 }
  0x9a   : > { %p3813_p4 = pnand %p3812_p3, %p3806_p13 }
  0x9c   : > { %3816 = shalt.err (!%p3813_p4)
}
  0x9d   : > { %s4970_s11 = sld [smem:[#allocation50_spill]]  ;;  %s3828_s18 = scalar_lea.vmem %s676_s24, 32 }
  0x9e   : > { %p3829_p2 = scmp.ne.s32.totalorder %s676_s24, %s3828_s18  ;;  %p3836_p9 = scmp.lt.s32.totalorder %s676_s24, %s676_s24 }
  0x9f   : > { %p3837_p10 = scmp.lt.s32.totalorder %s3828_s18, %s3828_s18 }
  0xa0   : > { %p3831_p5 = pnand %p3829_p2, %p4266_p7 }
  0xa1   : > { %p3838_p11 = por %p3837_p10, %p3836_p9 }
  0xa2   : > { %p3832_p8 = pneg %p3831_p5 }
  0xa3   : > { %3404 = dma.hbm_to_vmem [thread:$0]  (!%p4258_p6), %s4970_s11, 32, %s647_s27, [#allocation15], %s4967_s0, %s4967_s0, %s4083_s21  }
  0xa4   : > { %p3839_p12 = pnand %p3838_p11, %p3832_p8 }
  0xa6   : > { %3842 = shalt.err (!%p3839_p12)
}
  0xa7   : > { %s4971_s14 = sld [smem:[#allocation53_spill]]  ;;  %s4092_s27 = smov [#allocation22]  }
  0xa8   : > { %s701_s26 = sshll.u32 %s4092_s27, 4  ;;  %s702_s26 = int_to_ptr.vmem [resolvable:$true] %s701_s26 }
  0xa9   : > { %s3854_s5 = scalar_lea.vmem %s702_s26, 512  ;;  %p3862_p3 = scmp.lt.s32.totalorder %s702_s26, %s702_s26 }
  0xaa   : > { %p3855_p13 = scmp.ne.s32.totalorder %s702_s26, %s3854_s5  ;;  %p3863_p4 = scmp.lt.s32.totalorder %s3854_s5, %s3854_s5 }
  0xac   : > { %p3857_p0 = pnand %p3855_p13, %p4266_p7  ;;  %p3864_p2 = por %p3863_p4, %p3862_p3 }
  0xad   : > { %3410 = dma.hbm_to_vmem [thread:$0]  (!%p4258_p6), %s4971_s14, 32, %s676_s24, [#allocation18], %s4967_s0, %s4967_s0, %s4083_s21  }
  0xae   : > { %p3858_p1 = pneg %p3857_p0 }
  0xb0   : > { %p3865_p5 = pnand %p3864_p2, %p3858_p1 }
  0xb2   : > { %3868 = shalt.err (!%p3865_p5)
}
  0xb3   : > { %s4093_s12 = smov 128   ;;  %s4094_s4 = smov 8  }
  0xb4   : > { %s4972_s16 = sld [smem:[#allocation55_spill]]  ;;  %s4095_s24 = smov [#allocation25]  }
  0xb5   : > { %s729_s18 = sshll.u32 %s4095_s24, 4  ;;  %s4096_s25 = smov [#allocation26]   ;;  %s730_s18 = int_to_ptr.vmem [resolvable:$true] %s729_s18 }
  0xb6   : > { %s739_s22 = sshll.u32 %s4096_s25, 4  ;;  %s3880_s27 = scalar_lea.vmem %s730_s18, 16  ;;  %s740_s22 = int_to_ptr.vmem [resolvable:$true] %s739_s22 }
  0xb7   : > { %p3881_p8 = scmp.ne.s32.totalorder %s730_s18, %s3880_s27  ;;  %s3887_s5 = scalar_lea.vmem %s730_s18, 32 }
  0xb8   : > { %p3888_p11 = scmp.lt.s32.totalorder %s730_s18, %s730_s18  ;;  %p3889_p12 = scmp.lt.s32.totalorder %s3887_s5, %s3880_s27 }
  0xb9   : > { %p3883_p9 = pnand %p3881_p8, %p4266_p7 }
  0xba   : > { %3416 = dma.hbm_to_vmem [thread:$0]  (!%p4258_p6), %s4972_s16, 512, %s702_s26, [#allocation21], %s4093_s12, %s4093_s12, %s4094_s4  }
  0xbb   : > { %p3884_p10 = pneg %p3883_p9  ;;  %p3890_p13 = por %p3889_p12, %p3888_p11 }
  0xbd   : > { %p3891_p0 = pnand %p3890_p13, %p3884_p10 }
  0xbf   : > { %3894 = shalt.err (!%p3891_p0)
}
  0xc0   : > { %s4973_s19 = sld [smem:[#allocation58_spill]]  ;;  %s3906_s0 = scalar_lea.vmem %s740_s22, 256 }
  0xc1   : > { %p3907_p1 = scmp.ne.s32.totalorder %s740_s22, %s3906_s0  ;;  %p3914_p2 = scmp.lt.s32.totalorder %s740_s22, %s740_s22 }
  0xc2   : > { %p3915_p5 = scmp.lt.s32.totalorder %s3906_s0, %s3906_s0 }
  0xc3   : > { %p3909_p3 = pnand %p3907_p1, %p4266_p7 }
  0xc4   : > { %p3916_p8 = por %p3915_p5, %p3914_p2 }
  0xc5   : > { %p3910_p4 = pneg %p3909_p3 }
  0xc6   : > { %3422 = dma.hbm_to_vmem [thread:$0]  (!%p4258_p6), %s4973_s19, 16, %s730_s18, [#allocation24]  }
  0xc7   : > { %p3917_p9 = pnand %p3916_p8, %p3910_p4 }
  0xc9   : > { %3920 = shalt.err (!%p3917_p9)
}
  0xca   : > { %3425 = dma.hbm_to_vmem [thread:$0]  (!%p4258_p6), %s4919_s20, 256, %s740_s22, [#allocation27], %s4093_s12, %s4093_s12, %s4094_s4  }
  0xcb   : > { %s2965_s6 = sadd.s32 4294967294, %s4077_s30   ;;  %s4405_s2 = sadd.s32 1, %s4077_s30  }
  0xcc   : > { %s52_s18 = ssub.s32 %s4077_s30, %s4405_s2  ;;  %s55_s27 = sadd.s32 1, %s4073_s29 }
  0xcd   : > { %p53_p7 = scmp.eq.s32.totalorder %s52_s18, 0  ;;  %p62_p10 = scmp.ne.s32.totalorder %s4073_s29, %s4069_s28 }
  0xce   : > { %p63_p11 = scmp.eq.s32.totalorder %s4077_s30, 0  ;;  %p68_p12 = scmp.ne.s32.totalorder %s4069_s28, %s4065_s3 }
  0xcf   : > { %s4416_s5 = scalar_select %p53_p7, %s4073_s29, %s55_s27  }
  0xd0   : > { %p4418_p13 = por %p63_p11, %p62_p10  ;;  %p4975_p0 = scmp.eq.s32.totalorder %s4244_s23, 0 }
  0xd1   : > { %p538_p1 = scmp.eq.s32.totalorder %s4244_s23, 1  ;;  %p544_p3 = scmp.eq.s32.totalorder %s2965_s6, 1 }
  0xd2   : > { %p4424_p6 = por %p4975_p0, %p68_p12  ;;  %p3451_p4 = scmp.lt.s32.totalorder %s4077_s30, 2 }
  0xd3   : > { %s4431_s4 = sand.u32 1, %s4073_s29   ;;  %p4433_p2 = por %p538_p1, %p62_p10 }
  0xd4   : > { %s4976_s12 = scalar_select %p4424_p6, 1, 0 }
  0xd5   : > { %s4977_s22 = scalar_select %p4433_p2, 1, 0 }
  0xd6   : > { %p4437_p5 = por %p544_p3, %p68_p12  ;;  %s2982_s0 = sshll.u32 %s4431_s4, 3 }
  0xd7   : > { %s2983_s24 = sshll.u32 %s4077_s30, 7  ;;  %s4979_s27 = sld [smem:[#allocation40_spill]] }
  0xd8   : > { %s4978_s21 = scalar_select %p4437_p5, 1, 0 }
  0xd9   : > { %s760_s6 = scalar_lea.vmem [#allocation2], %s2982_s0  ;;  %p4452_p8 = pnand %p3451_p4, %p4418_p13 }
  0xda   : > { %s767_s8 = sshll.u32 %s760_s6, 4  ;;  %s757_s13 = scalar_lea.sflag [#allocation3], %s4431_s4  ;;  %s4448_s8 = int_to_ptr.vmem [resolvable:$true] %s767_s8 }
  0xdb   : > { %p3923_p7 = pneg %p4452_p8 }
  0xdd   : > { %s4446_s7 = scalar_lea.hbm %s4979_s27, %s2983_s24  ;;  %s3926_s26 = scalar_lea.hbm %s4979_s27, 256 }
  0xde   : > { %s3921_s14 = scalar_lea.hbm %s4446_s7, 128  ;;  %p3927_p12 = scmp.lt.s32.totalorder %s4446_s7, %s4979_s27 }
  0xdf   : > { %p3922_p9 = scmp.ne.s32.totalorder %s4446_s7, %s3921_s14  ;;  %p3928_p13 = scmp.lt.s32.totalorder %s3926_s26, %s3921_s14 }
  0xe1   : > { %p3924_p10 = pnand %p3923_p7, %p3922_p9  ;;  %p3929_p0 = por %p3928_p13, %p3927_p12 }
  0xe3   : > { %p3925_p11 = pneg %p3924_p10 }
  0xe5   : > { %p3930_p1 = pnand %p3929_p0, %p3925_p11 }
  0xe7   : > { %3933 = shalt.err (!%p3930_p1)
}
  0xe8   : > { %s3934_s6 = scalar_lea.vmem %s4448_s8, 128  ;;  %s4097_s0 = smov [#allocation2]  }
  0xe9   : > { %p3935_p3 = scmp.ne.s32.totalorder %s4448_s8, %s3934_s6  ;;  %s3939_s24 = sshll.u32 %s4097_s0, 4  ;;  %s3940_s24 = int_to_ptr.vmem [resolvable:$false] %s3939_s24 }
  0xea   : > { %s3941_s11 = scalar_lea.vmem %s3940_s24, 256  ;;  %p3942_p10 = scmp.lt.s32.totalorder %s4448_s8, %s3940_s24 }
  0xeb   : > { %p3937_p4 = pnand %p3935_p3, %p3923_p7  ;;  %p3943_p5 = scmp.lt.s32.totalorder %s3941_s11, %s3934_s6 }
  0xed   : > { %p3938_p9 = pneg %p3937_p4  ;;  %p3944_p2 = por %p3943_p5, %p3942_p10 }
  0xef   : > { %p3945_p12 = pnand %p3944_p2, %p3938_p9 }
  0xf1   : > { %3948 = shalt.err (!%p3945_p12)
}
  0xf2   : > { %3429 = dma.hbm_to_vmem [thread:$0]  (!%p4452_p8), %s4446_s7, 128, %s4448_s8, %s757_s13  }
  0xf3   : > { %s2984_s14 = sshll.u32 %s4077_s30, 4  ;;  %s777_s26 = scalar_lea.vmem [#allocation5], %s4431_s4 }
  0xf4   : > { %s784_s25 = sshll.u32 %s777_s26, 4  ;;  %s4981_s15 = sld [smem:[#allocation41_spill]]  ;;  %s785_s25 = int_to_ptr.vmem [resolvable:$true] %s784_s25 }
  0xf5   : > { %s4982_s11 = sand.u32 1, %s4077_s30  }
  0xf6   : > { %s775_s6 = scalar_lea.sflag [#allocation6], %s4982_s11 }
  0xfa   : > { %s782_s24 = scalar_lea.hbm %s4981_s15, %s2984_s14  ;;  %s3954_s7 = scalar_lea.hbm %s4981_s15, 32 }
  0xfb   : > { %s3949_s16 = scalar_lea.hbm %s782_s24, 16  ;;  %p3955_p13 = scmp.lt.s32.totalorder %s782_s24, %s4981_s15 }
  0xfc   : > { %p3950_p2 = scmp.ne.s32.totalorder %s782_s24, %s3949_s16  ;;  %p3956_p0 = scmp.lt.s32.totalorder %s3954_s7, %s3949_s16 }
  0xfe   : > { %p3952_p5 = pnand %p3950_p2, %p3923_p7  ;;  %p3957_p1 = por %p3956_p0, %p3955_p13 }
 0x100   : > { %p3953_p11 = pneg %p3952_p5 }
 0x102   : > { %p3958_p3 = pnand %p3957_p1, %p3953_p11 }
 0x104   : > { %3961 = shalt.err (!%p3958_p3)
}
 0x105   : > { %s3962_s4 = scalar_lea.vmem %s785_s25, 16  ;;  %s4098_s14 = smov [#allocation5]  }
 0x106   : > { %p3963_p4 = scmp.ne.s32.totalorder %s785_s25, %s3962_s4  ;;  %s3967_s26 = sshll.u32 %s4098_s14, 4  ;;  %s3968_s26 = int_to_ptr.vmem [resolvable:$false] %s3967_s26 }
 0x107   : > { %s3969_s17 = scalar_lea.vmem %s3968_s26, 32  ;;  %p3970_p12 = scmp.lt.s32.totalorder %s785_s25, %s3968_s26 }
 0x108   : > { %p3965_p9 = pnand %p3963_p4, %p3923_p7  ;;  %p3971_p2 = scmp.lt.s32.totalorder %s3969_s17, %s3962_s4 }
 0x10a   : > { %p3966_p10 = pneg %p3965_p9  ;;  %p3972_p5 = por %p3971_p2, %p3970_p12 }
 0x10c   : > { %p3973_p6 = pnand %p3972_p5, %p3966_p10 }
 0x10e   : > { %3976 = shalt.err (!%p3973_p6)
}
 0x10f   : > { %3432 = dma.hbm_to_vmem [thread:$0]  (!%p4452_p8), %s782_s24, 16, %s785_s25, %s775_s6  }
 0x110   : > { %p4983_p11 = scmp.ne.s32.totalorder %s4957_s1, 0 }
 0x111   : > { %s4506_s16 = sand.u32 (!%p4983_p11), 1, %s4069_s28   ;;  %p4984_p7 = scmp.ne.s32.totalorder (!%p4983_p11), %s4976_s12, 0 }
 0x112   : > { %793 = sbr.rel (%p4983_p11) target bundleno = 5965 (0x174d), region = 108  ;;  %s4935_s19 = sshll.u32 (!%p4983_p11), %s4506_s16, 3 }
 0x113   : > { %s796_s18 = scalar_lea.sflag (!%p4983_p11), [#allocation3], %s4506_s16  ;;  %s799_s0 = scalar_lea.vmem (!%p4983_p11), [#allocation2], %s4935_s19 }
 0x117   : > { %4020 = dma.done.wait (%p4984_p7), %s796_s18, 128  }
 0x118   : > { %4022 = vsyncadd (%p4984_p7), %s796_s18, 4294967168  ;;  %s804_s9 = sand.u32 1, %s4244_s23   ;;  %s807_s25 = scalar_lea.vmem [#allocation5], %s4506_s16 }
 0x119   : > { %s805_s1 = scalar_lea.sflag [#allocation6], %s804_s9 }
 0x11a   : > { %4024 = dma.done.wait (%p4984_p7), %s805_s1, 16  }
 0x11b   : > { %4026 = vsyncadd (%p4984_p7), %s805_s1, 4294967280  ;;  %p4985_p6 = scmp.eq.s32.totalorder %s4244_s23, 0 }
 0x11d   : > { %4028 = dma.done.wait (%p4985_p6), [#allocation6], 16   ;;  %p4986_p8 = pmov %p4985_p6 }
 0x11e   : > { %p4987_p13 = pmov %p4985_p6 }
 0x11f   : > { %4030 = vsyncadd (%p4986_p8), [#allocation6], 4294967280 }
 0x120   : > { %4032 = dma.done.wait (%p4987_p13), [#allocation9], 48   ;;  %p4988_p0 = pmov %p4985_p6 }
 0x122   : > { %4034 = vsyncadd (%p4988_p0), [#allocation9], 4294967248  ;;  %p4989_p1 = pmov %p4988_p0 }
 0x123   : > { %p4990_p3 = pmov %p4988_p0 }
 0x124   : > { %4036 = dma.done.wait (%p4989_p1), [#allocation12], 64  }
 0x125   : > { %4038 = vsyncadd (%p4990_p3), [#allocation12], 4294967232  ;;  %p4991_p4 = pmov %p4988_p0 }
 0x126   : > { %p4992_p9 = pmov %p4988_p0 }
 0x127   : > { %4040 = dma.done.wait (%p4991_p4), [#allocation15], 64  }
 0x128   : > { %4042 = vsyncadd (%p4992_p9), [#allocation15], 4294967232  ;;  %p4993_p10 = pmov %p4988_p0 }
 0x129   : > { %p4994_p12 = pmov %p4988_p0 }
 0x12a   : > { %4044 = dma.done.wait (%p4993_p10), [#allocation18], 64  }
 0x12b   : > { %4046 = vsyncadd (%p4994_p12), [#allocation18], 4294967232  ;;  %p4995_p2 = pmov %p4988_p0 }
 0x12c   : > { %p4996_p5 = pmov %p4988_p0 }
 0x12d   : > { %4048 = dma.done.wait (%p4995_p2), [#allocation21], 544  }
 0x12e   : > { %4050 = vsyncadd (%p4996_p5), [#allocation21], 4294966752  ;;  %p4997_p11 = pmov %p4988_p0 }
 0x12f   : > { %p4998_p7 = pmov %p4988_p0 }
 0x130   : > { %4052 = dma.done.wait (%p4997_p11), [#allocation24], 32  }
 0x131   : > { %4054 = vsyncadd (%p4998_p7), [#allocation24], 4294967264  ;;  %p4999_p6 = pmov %p4988_p0 }
 0x132   : > { %p5000_p8 = pmov %p4988_p0 }
 0x133   : > { %4056 = dma.done.wait (%p4999_p6), [#allocation27], 256  }
 0x134   : > { %4058 = vsyncadd (%p5000_p8), [#allocation27], 4294967040  ;;  %vm932_vm0 = vcmask 261120   ;;  %v928_v0 = vld [vmem:[%s799_s0] sm:$0xff]  ;;  %s5001_s11 = sld [smem:[#allocation44_spill]]  ;;  %v4099_v8 = vmov 0.0  }
 0x135   : > { %v933_v1 = vsel %vm932_vm0, %v928_v0, 0.0  ;;  %3148 = vmatprep.subr.mxu0 %v4099_v8  ;;  %vm4100_vm1 = vmmov 0   ;;  %3159 = vmatprep.subr.mxu1 %v4099_v8  ;;  %v3002_v16 = vld [vmem:[#allocation7] ss:$0 sm:$0xff]  ;;  %v3003_v18 = vld [vmem:[#allocation8] ss:$0 sm:$0xff] }
 0x136   : > { %934 = vadd.xlane.f32.xlu0 %v933_v1  ;;  %3156 = vmatprep.mubr.msk.f32.mxu0 %vm4100_vm1, %v4099_v8  ;;  %v3004_v21 = vld [vmem:[#allocation10] ss:$0 sm:$0xff]  ;;  %s4101_s26 = smov 112   ;;  %s4102_s17 = smov 96   ;;  %vm1048_vm2 = vcmask 130048   ;;  %vm1131_vm3 = vcmask 64512  }
 0x137   : > { %3161 = vmatprep.mubr.msk.f32.mxu1 %vm4100_vm1, %v4099_v8  ;;  %s4103_s18 = smov 80   ;;  %v4599_v29 = vld [vmem:[%s807_s25] ss:$0 sm:$0xff]  ;;  %s4104_s0 = smov 48   ;;  %vm1613_vm4 = vcmask 523264  }
 0x138   : > { %s4105_s9 = smov 64   ;;  %s5002_s12 = sld [smem:[#allocation46_spill]] }
 0x139   : > { %s4106_s14 = smov 16   ;;  %s5003_s24 = sld [smem:[#allocation51_spill]] }
 0x13a   : > { %v964_v7 = vld [vmem:[%s5001_s11 + $0x18] sm:$0xff]  ;;  %v963_v9 = vld [vmem:[%s5001_s11 + $0x10] sm:$0xff]  ;;  %v962_v10 = vld [vmem:[%s5001_s11 + $0x8] sm:$0xff]  ;;  %s5004_s25 = sld [smem:[#allocation57_spill]]  ;;  %s2729_s19 = scalar_lea.sflag [#allocation4], %s4506_s16 }
 0x13b   : > { %3149 = vmatpush3.msra.mxu0 %v964_v7  ;;  %v961_v11 = vld [vmem:[%s5001_s11] sm:$0xff]  ;;  %s5007_s7 = sld [smem:[#allocation60_spill]]  ;;  %p5008_p0 = scmp.ne.s32.totalorder %s4977_s22, 0 }
 0x13c   : > { %3150 = vmatprep.subr.mxu0 %v4099_v8 }
 0x13d   : > { %3151 = vmatpush3.msra.mxu0 %v963_v9 }
 0x13e   : > { %3152 = vmatprep.subr.mxu0 %v4099_v8  ;;  %v1394_v57 = vld [vmem:[%s5002_s12 + $0x18] sm:$0xff]  ;;  %v1393_v58 = vld [vmem:[%s5002_s12 + $0x10] sm:$0xff]  ;;  %v1392_v59 = vld [vmem:[%s5002_s12 + $0x8] sm:$0xff] }
 0x13f   : > { %3153 = vmatpush3.msra.mxu0 %v962_v10  ;;  %v1391_v60 = vld [vmem:[%s5002_s12] sm:$0xff] }
 0x140   : > { %3154 = vmatprep.subr.mxu0 %v4099_v8 }
 0x141   : > { %3155 = vmatpush3.msra.mxu0 %v961_v11 }
 0x142   : > { %3169 = vmatprep.subr.mxu0 %v4099_v8 }
 0x1bf   : > { %v935_v2 = vpop.xlane.xlu0 %934 }
 0x1c0   : > { %v937_v3 = vmul.f32 0.03125, %v935_v2 }
 0x1c2   : > { %v938_v4 = vsub.f32 %v928_v0, %v937_v3  ;;  %v3013_v3 = vld [vmem:[#allocation11] ss:$0 sm:$0xff] }
 0x1c4   : > { %v939_v5 = vmul.f32 %v938_v4, %v938_v4 }
 0x1c6   : > { %v940_v6 = vsel %vm932_vm0, %v939_v5, 0.0 }
 0x1c7   : > { %941 = vadd.xlane.f32.xlu0 %v940_v6 }
 0x250   : > { %v942_v12 = vpop.xlane.xlu0 %941 }
 0x251   : > { %v943_v13 = vmul.f32 0.03125, %v942_v12 }
 0x253   : > { %v944_v14 = vadd.f32 1e-05, %v943_v13 }
 0x255   : > { %3525 = vrsqrt.f32 %v944_v14 }
 0x262   : > { %v3526_v15 = vpop.eup %3525 }
 0x263   : > { %v946_v17 = vmul.f32 %v3526_v15, %v938_v4  ;;  %v1508_v15 = vld [vmem:[%s4909_s10 + $0x18] sm:$0xff] }
 0x265   : > { %v953_v19 = vmul.f32 %v3002_v16, %v946_v17  ;;  %v1507_v16 = vld [vmem:[%s4909_s10 + $0x10] sm:$0xff]  ;;  %v1506_v17 = vld [vmem:[%s4909_s10 + $0x8] sm:$0xff] }
 0x267   : > { %v4578_v20 = vadd.f32 %v3003_v18, %v953_v19  ;;  %v1505_v18 = vld [vmem:[%s4909_s10] sm:$0xff] }
 0x269   : > { %3157 = vmatmul.mubr.msk.f32.vlgmr.msra.gmra.mxu0 %vm932_vm0, %v4578_v20 }
 0x26a   : > { %3171 = vmatprep.mubr.msk.f32.mxu0 %vm4100_vm1, %v4099_v8 }
 0x329   : > { %v1041_v22 = vpop.f32.mrf.mxu0 }
 0x32a   : > { %v1042_v23 = vadd.f32 %v3004_v21, %v1041_v22 }
 0x32b   : > { %v3158_v24 = vpop.f32.mrf.mxu0 }
 0x32c   : > { %1219 = vrot.lane.b32.xlu0 %v1042_v23, %s4101_s26  ;;  %1046 = vrot.lane.b32.xlu1 %v1042_v23, %s4102_s17 }
 0x330   : > { %1221 = vrot.lane.b32.xlu1 %v1042_v23, %s4103_s18 }
 0x39e   : > { %v1047_v25 = vpop.permute.xlu1 %1046  ;;  %v1220_v27 = vpop.permute.xlu0 %1219 }
 0x39f   : > { %3160 = vmatpush3.xpose.msk.msra.mxu1 %vm1048_vm2, %v1047_v25  ;;  %v3016_v25 = vld [vmem:[#allocation14] ss:$0 sm:$0xff] }
 0x3a0   : > { %3164 = vmatprep.subr.mxu1 %v4099_v8 }
 0x3a2   : > { %3162 = vmatmul.mubr.msk.f32.vlgmr.msra.gmra.mxu1 %vm1048_vm2, %v1042_v23  ;;  %v1222_v26 = vpop.permute.xlu1 %1221 }
 0x3a3   : > { %3170 = vmatpush3.xpose.msk.msra.mxu0 %vm1048_vm2, %v1222_v26  ;;  %3166 = vmatprep.mubr.msk.f32.mxu1 %vm4100_vm1, %v4099_v8 }
 0x3a4   : > { %3179 = vmatprep.subr.mxu0 %v4099_v8 }
 0x3a6   : > { %3172 = vmatmul.mubr.msk.f32.vlgmr.msra.gmra.mxu0 %vm1048_vm2, %v1220_v27 }
 0x3a7   : > { %3187 = vmatprep.mubr.msk.f32.mxu0 %vm4100_vm1, %v4099_v8  ;;  %3180 = vmatpush3.msra.mxu0 %v1394_v57 }
 0x3a8   : > { %3181 = vmatprep.subr.mxu0 %v4099_v8 }
 0x3a9   : > { %3182 = vmatpush3.msra.mxu0 %v1393_v58 }
 0x3aa   : > { %3183 = vmatprep.subr.mxu0 %v4099_v8 }
 0x3ab   : > { %3184 = vmatpush3.msra.mxu0 %v1392_v59 }
 0x3ac   : > { %3185 = vmatprep.subr.mxu0 %v4099_v8 }
 0x3ad   : > { %3186 = vmatpush3.msra.mxu0 %v1391_v60 }
 0x3ae   : > { %3201 = vmatprep.subr.mxu0 %v4099_v8 }
 0x462   : > { %v1119_v28 = vpop.f32.mrf.mxu1 }
 0x463   : > { %v1123_v30 = vmul.f32 0.25, %v1119_v28  ;;  %v1605_v28 = vld [vmem:[%s5003_s24 + $0x38] sm:$0xff] }
 0x464   : > { %v3163_v31 = vpop.f32.mrf.mxu1 }
 0x465   : > { %v1130_v32 = vadd.f32 %v4599_v29, %v1123_v30  ;;  %v1604_v30 = vld [vmem:[%s5003_s24 + $0x30] sm:$0xff]  ;;  %v1603_v31 = vld [vmem:[%s5003_s24 + $0x28] sm:$0xff] }
 0x466   : > { %v1293_v33 = vpop.f32.mrf.mxu0 }
 0x467   : > { %v1297_v34 = vmul.f32 0.25, %v1293_v33  ;;  %v1132_v35 = vsel %vm1131_vm3, %v1130_v32, -inf  ;;  %v1601_v33 = vld [vmem:[%s5003_s24 + $0x18] sm:$0xff] }
 0x468   : > { %1133 = vmax.xlane.f32.xlu1 %v1132_v35  ;;  %v3173_v36 = vpop.f32.mrf.mxu0  ;;  %v1599_v35 = vld [vmem:[%s5003_s24 + $0x8] sm:$0xff] }
 0x469   : > { %v1298_v37 = vadd.f32 %v4599_v29, %v1297_v34  ;;  %v1600_v34 = vld [vmem:[%s5003_s24 + $0x10] sm:$0xff]  ;;  %v1598_v36 = vld [vmem:[%s5003_s24] sm:$0xff] }
 0x46b   : > { %v1299_v38 = vsel %vm1131_vm3, %v1298_v37, -inf }
 0x46c   : > { %1300 = vmax.xlane.f32.xlu0 %v1299_v38 }
 0x482   : > { %1310 = vrot.lane.b32.xlu0 %v1042_v23, %s4104_s0 }
 0x4f1   : > { %v1134_v39 = vpop.xlane.xlu1 %1133 }
 0x4f2   : > { %v1135_v40 = vsub.f32 %v1130_v32, %v1134_v39  ;;  %v1602_v32 = vld [vmem:[%s5003_s24 + $0x20] sm:$0xff] }
 0x4f4   : > { %v1136_v41 = vmul.f32 1.442695, %v1135_v40 }
 0x4f5   : > { %v1301_v42 = vpop.xlane.xlu0 %1300 }
 0x4f6   : > { %3527 = vpow2.f32 %v1136_v41  ;;  %v1302_v43 = vsub.f32 %v1298_v37, %v1301_v42  ;;  %v3017_v37 = vld [vmem:[#allocation16] ss:$0 sm:$0xff] }
 0x4f8   : > { %v1303_v44 = vmul.f32 1.442695, %v1302_v43 }
 0x4f9   : > { %v1311_v54 = vpop.permute.xlu0 %1310 }
 0x4fa   : > { %3529 = vpow2.f32 %v1303_v44 }
 0x503   : > { %v3528_v45 = vpop.eup %3527 }
 0x504   : > { %v1138_v46 = vsel %vm1131_vm3, %v3528_v45, 0.0 }
 0x505   : > { %1139 = vadd.xlane.f32.xlu1 %v1138_v46 }
 0x507   : > { %v3530_v47 = vpop.eup %3529 }
 0x508   : > { %v1305_v48 = vsel %vm1131_vm3, %v3530_v47, 0.0 }
 0x509   : > { %1306 = vadd.xlane.f32.xlu1 %v1305_v48 }
 0x51a   : > { %1143 = vrot.lane.b32.xlu1 %v1042_v23, %s4105_s9  ;;  %v3015_v23 = vld [vmem:[#allocation13] ss:$0 sm:$0xff] }
 0x58e   : > { %v1140_v49 = vpop.xlane.xlu1 %1139 }
 0x58f   : > { %3531 = vrcp.f32 %v1140_v49 }
 0x592   : > { %v1307_v50 = vpop.xlane.xlu1 %1306 }
 0x593   : > { %3533 = vrcp.f32 %v1307_v50  ;;  %v3019_v50 = vld [vmem:[#allocation17] ss:$0 sm:$0xff] }
 0x596   : > { %v1144_v51 = vpop.permute.xlu1 %1143 }
 0x597   : > { %3165 = vmatpush3.msra.mxu1 %v1144_v51 }
 0x598   : > { %3174 = vmatprep.subr.mxu1 %v4099_v8 }
 0x59c   : > { %v3532_v52 = vpop.eup %3531 }
 0x59d   : > { %v1142_v53 = vmul.f32 %v3532_v52, %v3528_v45 }
 0x59f   : > { %3167 = vmatmul.mubr.msk.f32.vlgmr.msra.gmra.mxu1 %vm1131_vm3, %v1142_v53 }
 0x5a0   : > { %v3534_v55 = vpop.eup %3533  ;;  %3175 = vmatpush3.msra.mxu1 %v1311_v54  ;;  %3176 = vmatprep.mubr.msk.f32.mxu1 %vm4100_vm1, %v4099_v8 }
 0x5a1   : > { %v1309_v56 = vmul.f32 %v3534_v55, %v3530_v47  ;;  %3190 = vmatprep.subr.mxu1 %v4099_v8 }
 0x5a3   : > { %3177 = vmatmul.mubr.msk.f32.vlgmr.msra.gmra.mxu1 %vm1131_vm3, %v1309_v56 }
 0x5a4   : > { %3198 = vmatprep.mubr.msk.f32.mxu1 %vm4100_vm1, %v4099_v8  ;;  %3191 = vmatpush3.msra.mxu1 %v1508_v15 }
 0x5a5   : > { %3192 = vmatprep.subr.mxu1 %v4099_v8 }
 0x5a6   : > { %3193 = vmatpush3.msra.mxu1 %v1507_v16 }
 0x5a7   : > { %3194 = vmatprep.subr.mxu1 %v4099_v8 }
 0x5a8   : > { %3195 = vmatpush3.msra.mxu1 %v1506_v17 }
 0x5a9   : > { %3196 = vmatprep.subr.mxu1 %v4099_v8 }
 0x5aa   : > { %3197 = vmatpush3.msra.mxu1 %v1505_v18 }
 0x5ab   : > { %3220 = vmatprep.subr.mxu1 %v4099_v8 }
 0x65f   : > { %v1215_v61 = vpop.f32.mrf.mxu1 }
 0x661   : > { %v3168_v62 = vpop.f32.mrf.mxu1 }
 0x662   : > { %v3025_v62 = vld [vmem:[%s5001_s11 + $0x30] sm:$0xff] }
 0x663   : > { %v1382_v63 = vpop.f32.mrf.mxu1 }
 0x664   : > { %1387 = vrot.lane.b32.xlu1 %v1382_v63, %s4106_s14  ;;  %v3024_v63 = vld [vmem:[%s5001_s11 + $0x28] sm:$0xff] }
 0x665   : > { %v3178_v0 = vpop.f32.mrf.mxu1 }
 0x666   : > { %v3023_v0 = vld [vmem:[%s5001_s11 + $0x20] sm:$0xff] }
 0x6d6   : > { %v1388_v1 = vpop.permute.xlu1 %1387 }
 0x6d7   : > { %v1390_v2 = vsel %vm1048_vm2, %v1215_v61, %v1388_v1  ;;  %v3026_v61 = vld [vmem:[%s5001_s11 + $0x38] sm:$0xff] }
 0x6d8   : > { %3188 = vmatmul.mubr.msk.f32.vlgmr.msra.gmra.mxu0 %vm932_vm0, %v1390_v2 }
 0x6d9   : > { %3217 = vmatprep.mubr.msk.f32.mxu0 %vm4100_vm1, %v4099_v8  ;;  %3202 = vmatpush3.msra.mxu0 %v1605_v28 }
 0x6da   : > { %3203 = vmatprep.subr.mxu0 %v4099_v8 }
 0x6db   : > { %3204 = vmatpush3.msra.mxu0 %v1604_v30 }
 0x6dc   : > { %3205 = vmatprep.subr.mxu0 %v4099_v8 }
 0x6dd   : > { %3206 = vmatpush3.msra.mxu0 %v1603_v31 }
 0x6de   : > { %3207 = vmatprep.subr.mxu0 %v4099_v8 }
 0x6df   : > { %3208 = vmatpush3.msra.mxu0 %v1602_v32 }
 0x6e0   : > { %3209 = vmatprep.subr.mxu0 %v4099_v8 }
 0x6e1   : > { %3210 = vmatpush3.msra.mxu0 %v1601_v33 }
 0x6e2   : > { %3211 = vmatprep.subr.mxu0 %v4099_v8 }
 0x6e3   : > { %3212 = vmatpush3.msra.mxu0 %v1600_v34 }
 0x6e4   : > { %3213 = vmatprep.subr.mxu0 %v4099_v8 }
 0x6e5   : > { %3214 = vmatpush3.msra.mxu0 %v1599_v35 }
 0x6e6   : > { %3215 = vmatprep.subr.mxu0 %v4099_v8 }
 0x6e7   : > { %3216 = vmatpush3.msra.mxu0 %v1598_v36 }
 0x6e8   : > { %3241 = vmatprep.subr.mxu0 %v4099_v8 }
 0x798   : > { %v1471_v4 = vpop.f32.mrf.mxu0 }
 0x799   : > { %v1472_v5 = vadd.f32 %v3013_v3, %v1471_v4 }
 0x79a   : > { %v3189_v6 = vpop.f32.mrf.mxu0 }
 0x79b   : > { %v1475_v7 = vadd.f32 %v1472_v5, %v4578_v20  ;;  %v3021_v5 = vld [vmem:[#allocation19] ss:$0 sm:$0xff] }
 0x79d   : > { %v1478_v9 = vsel %vm932_vm0, %v1475_v7, 0.0 }
 0x79e   : > { %1479 = vadd.xlane.f32.xlu1 %v1478_v9 }
 0x827   : > { %v1480_v10 = vpop.xlane.xlu1 %1479 }
 0x828   : > { %v1481_v11 = vmul.f32 0.03125, %v1480_v10 }
 0x82a   : > { %v1482_v12 = vsub.f32 %v1475_v7, %v1481_v11  ;;  %v3022_v7 = vld [vmem:[#allocation20] ss:$0 sm:$0xff]  ;;  %v3027_v11 = vld [vmem:[#allocation10 + $0x1] ss:$0 sm:$0xff] }
 0x82c   : > { %v1483_v13 = vmul.f32 %v1482_v12, %v1482_v12 }
 0x82e   : > { %v1484_v14 = vsel %vm932_vm0, %v1483_v13, 0.0 }
 0x82f   : > { %1485 = vadd.xlane.f32.xlu0 %v1484_v14 }
 0x8b8   : > { %v1486_v19 = vpop.xlane.xlu0 %1485 }
 0x8b9   : > { %v1487_v20 = vmul.f32 0.03125, %v1486_v19 }
 0x8bb   : > { %v1488_v21 = vadd.f32 1e-05, %v1487_v20 }
 0x8bd   : > { %3535 = vrsqrt.f32 %v1488_v21 }
 0x8ca   : > { %v3536_v22 = vpop.eup %3535 }
 0x8cb   : > { %v1490_v24 = vmul.f32 %v3536_v22, %v1482_v12 }
 0x8cd   : > { %v1497_v26 = vmul.f32 %v3015_v23, %v1490_v24 }
 0x8cf   : > { %v1504_v27 = vadd.f32 %v3016_v25, %v1497_v26 }
 0x8d1   : > { %3199 = vmatmul.mubr.msk.f32.vlgmr.msra.gmra.mxu1 %vm932_vm0, %v1504_v27 }
 0x8d2   : > { %3228 = vmatprep.mubr.msk.f32.mxu1 %vm4100_vm1, %v4099_v8  ;;  %3221 = vmatpush3.msra.mxu1 %v3026_v61 }
 0x8d3   : > { %3222 = vmatprep.subr.mxu1 %v4099_v8 }
 0x8d4   : > { %3223 = vmatpush3.msra.mxu1 %v3025_v62 }
 0x8d5   : > { %3224 = vmatprep.subr.mxu1 %v4099_v8 }
 0x8d6   : > { %3225 = vmatpush3.msra.mxu1 %v3024_v63 }
 0x8d7   : > { %3226 = vmatprep.subr.mxu1 %v4099_v8 }
 0x8d8   : > { %3227 = vmatpush3.msra.mxu1 %v3023_v0 }
 0x8d9   : > { %3231 = vmatprep.subr.mxu1 %v4099_v8 }
 0x991   : > { %v1585_v38 = vpop.f32.mrf.mxu1 }
 0x992   : > { %v1586_v39 = vadd.f32 %v3017_v37, %v1585_v38 }
 0x993   : > { %v3200_v40 = vpop.f32.mrf.mxu1 }
 0x994   : > { %v1590_v41 = vmul.f32 0.044715, %v1586_v39  ;;  %v1589_v47 = vmul.f32 0.5, %v1586_v39 }
 0x996   : > { %v1591_v42 = vmul.f32 %v1590_v41, %v1586_v39 }
 0x998   : > { %v1592_v43 = vmul.f32 %v1591_v42, %v1586_v39 }
 0x99a   : > { %v1593_v44 = vadd.f32 %v1592_v43, %v1586_v39 }
 0x99c   : > { %v1594_v45 = vmul.f32 0.7978846, %v1593_v44 }
 0x99e   : > { %3537 = vtanh.f32 %v1594_v45 }
 0x9ab   : > { %v3538_v46 = vpop.eup %3537 }
 0x9ac   : > { %v1596_v48 = vadd.f32 1.0, %v3538_v46  ;;  %v3038_v46 = vld [vmem:[%s5002_s12 + $0x38] sm:$0xff] }
 0x9ae   : > { %v1597_v49 = vmul.f32 %v1596_v48, %v1589_v47  ;;  %v3037_v47 = vld [vmem:[%s5002_s12 + $0x30] sm:$0xff]  ;;  %v3036_v48 = vld [vmem:[%s5002_s12 + $0x28] sm:$0xff] }
 0x9b0   : > { %3218 = vmatmul.mubr.msk.f32.vlgmr.msra.gmra.mxu0 %vm1613_vm4, %v1597_v49  ;;  %v3035_v49 = vld [vmem:[%s5002_s12 + $0x20] sm:$0xff] }
 0x9b1   : > { %3243 = vmatprep.mubr.msk.f32.mxu0 %vm4100_vm1, %v4099_v8 }
 0xa70   : > { %v1683_v51 = vpop.f32.mrf.mxu0 }
 0xa71   : > { %v1684_v52 = vadd.f32 %v3019_v50, %v1683_v51 }
 0xa72   : > { %v3219_v53 = vpop.f32.mrf.mxu0 }
 0xa73   : > { %v1687_v54 = vadd.f32 %v1684_v52, %v1504_v27 }
 0xa75   : > { %v1690_v55 = vsel %vm932_vm0, %v1687_v54, 0.0 }
 0xa76   : > { %1691 = vadd.xlane.f32.xlu1 %v1690_v55 }
 0xaff   : > { %v1692_v56 = vpop.xlane.xlu1 %1691 }
 0xb00   : > { %v1693_v57 = vmul.f32 0.03125, %v1692_v56  ;;  %v3039_v56 = vld [vmem:[#allocation11 + $0x1] ss:$0 sm:$0xff] }
 0xb02   : > { %v1694_v58 = vsub.f32 %v1687_v54, %v1693_v57 }
 0xb04   : > { %v1695_v59 = vmul.f32 %v1694_v58, %v1694_v58 }
 0xb06   : > { %v1696_v60 = vsel %vm932_vm0, %v1695_v59, 0.0 }
 0xb07   : > { %1697 = vadd.xlane.f32.xlu1 %v1696_v60 }
 0xb90   : > { %v1698_v1 = vpop.xlane.xlu1 %1697 }
 0xb91   : > { %v1699_v2 = vmul.f32 0.03125, %v1698_v1 }
 0xb93   : > { %v1700_v3 = vadd.f32 1e-05, %v1699_v2 }
 0xb95   : > { %3539 = vrsqrt.f32 %v1700_v3  ;;  %v3046_v3 = vld [vmem:[%s4909_s10 + $0x38] sm:$0xff] }
 0xba2   : > { %v3540_v4 = vpop.eup %3539 }
 0xba3   : > { %v1702_v6 = vmul.f32 %v3540_v4, %v1694_v58  ;;  %v3045_v4 = vld [vmem:[%s4909_s10 + $0x30] sm:$0xff] }
 0xba5   : > { %v1709_v9 = vmul.f32 %v3021_v5, %v1702_v6  ;;  %v3044_v5 = vld [vmem:[%s4909_s10 + $0x28] sm:$0xff]  ;;  %v3043_v6 = vld [vmem:[%s4909_s10 + $0x20] sm:$0xff] }
 0xba7   : > { %v4713_v10 = vadd.f32 %v3022_v7, %v1709_v9 }
 0xba9   : > { %3229 = vmatmul.mubr.msk.f32.vlgmr.msra.gmra.mxu1 %vm932_vm0, %v4713_v10 }
 0xbaa   : > { %3233 = vmatprep.mubr.msk.f32.mxu1 %vm4100_vm1, %v4099_v8 }
 0xc69   : > { %v1799_v12 = vpop.f32.mrf.mxu1 }
 0xc6a   : > { %v1800_v13 = vadd.f32 %v3027_v11, %v1799_v12  ;;  %v3041_v12 = vld [vmem:[#allocation13 + $0x1] ss:$0 sm:$0xff] }
 0xc6b   : > { %v3230_v14 = vpop.f32.mrf.mxu1 }
 0xc6c   : > { %1971 = vrot.lane.b32.xlu1 %v1800_v13, %s4103_s18  ;;  %1804 = vrot.lane.b32.xlu0 %v1800_v13, %s4102_s17  ;;  %v3042_v14 = vld [vmem:[#allocation14 + $0x1] ss:$0 sm:$0xff]  ;;  %s5005_s17 = sld [smem:[#allocation59_spill]]  ;;  %s3068_s18 = sshll.u32 %s4244_s23, 7 }
 0xc6d   : > { %s4862_s8 = scalar_lea.hbm %s5007_s7, %s3068_s18  ;;  %s4107_s23 = smov [#allocation28]  }
 0xc6e   : > { %s3981_s4 = sshll.u32 %s4107_s23, 4  ;;  %s3982_s4 = int_to_ptr.vmem [resolvable:$false] %s3981_s4 }
 0xc70   : > { %1969 = vrot.lane.b32.xlu1 %v1800_v13, %s4101_s26  ;;  %s3983_s26 = scalar_lea.vmem %s3982_s4, 256 }
 0xcde   : > { %v1972_v15 = vpop.permute.xlu1 %1971  ;;  %v1805_v16 = vpop.permute.xlu0 %1804 }
 0xcdf   : > { %3232 = vmatpush3.xpose.msk.msra.mxu1 %vm1048_vm2, %v1805_v16  ;;  %3242 = vmatpush3.xpose.msk.msra.mxu0 %vm1048_vm2, %v1972_v15 }
 0xce0   : > { %3236 = vmatprep.subr.mxu1 %v4099_v8  ;;  %3251 = vmatprep.subr.mxu0 %v4099_v8 }
 0xce2   : > { %v1970_v17 = vpop.permute.xlu1 %1969  ;;  %3234 = vmatmul.mubr.msk.f32.vlgmr.msra.gmra.mxu1 %vm1048_vm2, %v1800_v13 }
 0xce3   : > { %3244 = vmatmul.mubr.msk.f32.vlgmr.msra.gmra.mxu0 %vm1048_vm2, %v1970_v17  ;;  %3238 = vmatprep.mubr.msk.f32.mxu1 %vm4100_vm1, %v4099_v8  ;;  %v3056_v17 = vld [vmem:[%s5003_s24 + $0x78] sm:$0xff] }
 0xce4   : > { %3259 = vmatprep.mubr.msk.f32.mxu0 %vm4100_vm1, %v4099_v8  ;;  %3252 = vmatpush3.msra.mxu0 %v3038_v46 }
 0xce5   : > { %3253 = vmatprep.subr.mxu0 %v4099_v8 }
 0xce6   : > { %3254 = vmatpush3.msra.mxu0 %v3037_v47 }
 0xce7   : > { %3255 = vmatprep.subr.mxu0 %v4099_v8 }
 0xce8   : > { %3256 = vmatpush3.msra.mxu0 %v3036_v48 }
 0xce9   : > { %3257 = vmatprep.subr.mxu0 %v4099_v8 }
 0xcea   : > { %3258 = vmatpush3.msra.mxu0 %v3035_v49  ;;  %v2479_v49 = vld [vmem:[#allocation22 + $0x18] sm:$0xff] }
 0xceb   : > { %3273 = vmatprep.subr.mxu0 %v4099_v8 }
 0xda2   : > { %v1876_v18 = vpop.f32.mrf.mxu1 }
 0xda3   : > { %v1880_v19 = vmul.f32 0.25, %v1876_v18  ;;  %v2043_v20 = vpop.f32.mrf.mxu0  ;;  %v3055_v18 = vld [vmem:[%s5003_s24 + $0x70] sm:$0xff] }
 0xda4   : > { %v2047_v21 = vmul.f32 0.25, %v2043_v20  ;;  %v3235_v22 = vpop.f32.mrf.mxu1  ;;  %v3053_v20 = vld [vmem:[%s5003_s24 + $0x60] sm:$0xff] }
 0xda5   : > { %v3245_v23 = vpop.f32.mrf.mxu0  ;;  %v1881_v24 = vadd.f32 %v4599_v29, %v1880_v19  ;;  %v3054_v19 = vld [vmem:[%s5003_s24 + $0x68] sm:$0xff]  ;;  %v3051_v22 = vld [vmem:[%s5003_s24 + $0x50] sm:$0xff] }
 0xda6   : > { %v2048_v25 = vadd.f32 %v4599_v29, %v2047_v21  ;;  %v3052_v21 = vld [vmem:[%s5003_s24 + $0x58] sm:$0xff]  ;;  %v3050_v23 = vld [vmem:[%s5003_s24 + $0x48] sm:$0xff] }
 0xda7   : > { %v1882_v26 = vsel %vm1131_vm3, %v1881_v24, -inf }
 0xda8   : > { %1883 = vmax.xlane.f32.xlu0 %v1882_v26  ;;  %v2049_v27 = vsel %vm1131_vm3, %v2048_v25, -inf }
 0xda9   : > { %2050 = vmax.xlane.f32.xlu1 %v2049_v27 }
 0xdba   : > { %1893 = vrot.lane.b32.xlu1 %v1800_v13, %s4105_s9 }
 0xe31   : > { %v1884_v28 = vpop.xlane.xlu0 %1883 }
 0xe32   : > { %v1885_v30 = vsub.f32 %v1881_v24, %v1884_v28  ;;  %v2051_v31 = vpop.xlane.xlu1 %2050  ;;  %v3049_v24 = vld [vmem:[%s5003_s24 + $0x40] sm:$0xff] }
 0xe33   : > { %v2052_v32 = vsub.f32 %v2048_v25, %v2051_v31  ;;  %v3047_v25 = vld [vmem:[#allocation16 + $0x1] ss:$0 sm:$0xff] }
 0xe34   : > { %v1886_v33 = vmul.f32 1.442695, %v1885_v30 }
 0xe35   : > { %v2053_v34 = vmul.f32 1.442695, %v2052_v32 }
 0xe36   : > { %3541 = vpow2.f32 %v1886_v33  ;;  %v1894_v35 = vpop.permute.xlu1 %1893 }
 0xe37   : > { %3237 = vmatpush3.msra.mxu1 %v1894_v35  ;;  %3543 = vpow2.f32 %v2053_v34 }
 0xe38   : > { %3246 = vmatprep.subr.mxu1 %v4099_v8 }
 0xe43   : > { %v3542_v29 = vpop.eup %3541 }
 0xe44   : > { %v1888_v36 = vsel %vm1131_vm3, %v3542_v29, 0.0  ;;  %v3544_v37 = vpop.eup %3543 }
 0xe45   : > { %1889 = vadd.xlane.f32.xlu0 %v1888_v36  ;;  %v2055_v38 = vsel %vm1131_vm3, %v3544_v37, 0.0 }
 0xe49   : > { %2056 = vadd.xlane.f32.xlu0 %v2055_v38  ;;  %v3057_v38 = vld [vmem:[#allocation17 + $0x1] ss:$0 sm:$0xff] }
 0xe5f   : > { %2060 = vrot.lane.b32.xlu0 %v1800_v13, %s4104_s0  ;;  %s5006_s0 = sshll.u32 %s4506_s16, 3 }
 0xe60   : > { %s927_s9 = scalar_lea.vmem [#allocation28], %s5006_s0 }
 0xe61   : > { %s2742_s1 = sshll.u32 %s927_s9, 4  ;;  %s2743_s1 = int_to_ptr.vmem [resolvable:$true] %s2742_s1 }
 0xe62   : > { %s3977_s13 = scalar_lea.vmem %s2743_s1, 128  ;;  %p3984_p4 = scmp.lt.s32.totalorder %s2743_s1, %s3982_s4 }
 0xe63   : > { %p3978_p13 = scmp.ne.s32.totalorder %s2743_s1, %s3977_s13  ;;  %p3985_p9 = scmp.lt.s32.totalorder %s3983_s26, %s3977_s13 }
 0xe65   : > { %p3979_p1 = pnand %p3978_p13, %p5008_p0  ;;  %p3986_p10 = por %p3985_p9, %p3984_p4 }
 0xe67   : > { %p3980_p3 = pneg %p3979_p1 }
 0xe69   : > { %p3987_p12 = pnand %p3986_p10, %p3980_p3 }
 0xece   : > { %v1890_v39 = vpop.xlane.xlu0 %1889 }
 0xecf   : > { %3545 = vrcp.f32 %v1890_v39 }
 0xed2   : > { %v2057_v40 = vpop.xlane.xlu0 %2056 }
 0xed3   : > { %3547 = vrcp.f32 %v2057_v40 }
 0xed6   : > { %v2061_v43 = vpop.permute.xlu0 %2060 }
 0xedc   : > { %v3546_v41 = vpop.eup %3545 }
 0xedd   : > { %v1892_v42 = vmul.f32 %v3546_v41, %v3542_v29 }
 0xedf   : > { %3239 = vmatmul.mubr.msk.f32.vlgmr.msra.gmra.mxu1 %vm1131_vm3, %v1892_v42 }
 0xee0   : > { %v3548_v44 = vpop.eup %3547  ;;  %3247 = vmatpush3.msra.mxu1 %v2061_v43  ;;  %3248 = vmatprep.mubr.msk.f32.mxu1 %vm4100_vm1, %v4099_v8 }
 0xee1   : > { %v2059_v45 = vmul.f32 %v3548_v44, %v3544_v37  ;;  %3262 = vmatprep.subr.mxu1 %v4099_v8 }
 0xee3   : > { %3249 = vmatmul.mubr.msk.f32.vlgmr.msra.gmra.mxu1 %vm1131_vm3, %v2059_v45 }
 0xee4   : > { %3270 = vmatprep.mubr.msk.f32.mxu1 %vm4100_vm1, %v4099_v8  ;;  %3263 = vmatpush3.msra.mxu1 %v3046_v3 }
 0xee5   : > { %3264 = vmatprep.subr.mxu1 %v4099_v8 }
 0xee6   : > { %3265 = vmatpush3.msra.mxu1 %v3045_v4 }
 0xee7   : > { %3266 = vmatprep.subr.mxu1 %v4099_v8 }
 0xee8   : > { %3267 = vmatpush3.msra.mxu1 %v3044_v5 }
 0xee9   : > { %3268 = vmatprep.subr.mxu1 %v4099_v8 }
 0xeea   : > { %3269 = vmatpush3.msra.mxu1 %v3043_v6 }
 0xeeb   : > { %3292 = vmatprep.subr.mxu1 %v4099_v8 }
 0xf9f   : > { %v1965_v50 = vpop.f32.mrf.mxu1 }
 0xfa1   : > { %v3240_v51 = vpop.f32.mrf.mxu1 }
 0xfa2   : > { %v2477_v51 = vld [vmem:[#allocation22 + $0x8] sm:$0xff] }
 0xfa3   : > { %v2132_v52 = vpop.f32.mrf.mxu1 }
 0xfa4   : > { %2137 = vrot.lane.b32.xlu1 %v2132_v52, %s4106_s14  ;;  %v2476_v52 = vld [vmem:[#allocation22] sm:$0xff] }
 0xfa5   : > { %v3250_v53 = vpop.f32.mrf.mxu1 }
0x1016   : > { %v2138_v54 = vpop.permute.xlu1 %2137 }
0x1017   : > { %v2140_v55 = vsel %vm1048_vm2, %v1965_v50, %v2138_v54  ;;  %v2478_v50 = vld [vmem:[#allocation22 + $0x10] sm:$0xff] }
0x1018   : > { %3260 = vmatmul.mubr.msk.f32.vlgmr.msra.gmra.mxu0 %vm932_vm0, %v2140_v55 }
0x1019   : > { %3289 = vmatprep.mubr.msk.f32.mxu0 %vm4100_vm1, %v4099_v8  ;;  %3274 = vmatpush3.msra.mxu0 %v3056_v17 }
0x101a   : > { %3275 = vmatprep.subr.mxu0 %v4099_v8 }
0x101b   : > { %3276 = vmatpush3.msra.mxu0 %v3055_v18 }
0x101c   : > { %3277 = vmatprep.subr.mxu0 %v4099_v8 }
0x101d   : > { %3278 = vmatpush3.msra.mxu0 %v3054_v19 }
0x101e   : > { %3279 = vmatprep.subr.mxu0 %v4099_v8 }
0x101f   : > { %3280 = vmatpush3.msra.mxu0 %v3053_v20 }
0x1020   : > { %3281 = vmatprep.subr.mxu0 %v4099_v8 }
0x1021   : > { %3282 = vmatpush3.msra.mxu0 %v3052_v21 }
0x1022   : > { %3283 = vmatprep.subr.mxu0 %v4099_v8 }
0x1023   : > { %3284 = vmatpush3.msra.mxu0 %v3051_v22 }
0x1024   : > { %3285 = vmatprep.subr.mxu0 %v4099_v8 }
0x1025   : > { %3286 = vmatpush3.msra.mxu0 %v3050_v23 }
0x1026   : > { %3287 = vmatprep.subr.mxu0 %v4099_v8 }
0x1027   : > { %3288 = vmatpush3.msra.mxu0 %v3049_v24 }
0x1028   : > { %3314 = vmatprep.subr.mxu0 %v4099_v8 }
0x10d8   : > { %v2223_v57 = vpop.f32.mrf.mxu0 }
0x10d9   : > { %v2224_v58 = vadd.f32 %v3039_v56, %v2223_v57  ;;  %v3059_v57 = vld [vmem:[#allocation19 + $0x1] ss:$0 sm:$0xff] }
0x10da   : > { %v3261_v59 = vpop.f32.mrf.mxu0 }
0x10db   : > { %v2227_v60 = vadd.f32 %v2224_v58, %v4713_v10  ;;  %v3060_v59 = vld [vmem:[#allocation20 + $0x1] ss:$0 sm:$0xff] }
0x10dd   : > { %v2232_v61 = vsel %vm932_vm0, %v2227_v60, 0.0 }
0x10de   : > { %2233 = vadd.xlane.f32.xlu1 %v2232_v61 }
0x1167   : > { %v2234_v62 = vpop.xlane.xlu1 %2233 }
0x1168   : > { %v2235_v63 = vmul.f32 0.03125, %v2234_v62  ;;  %v2564_v62 = vld [vmem:[%s5004_s25 + $0x18] sm:$0xff] }
0x116a   : > { %v2236_v0 = vsub.f32 %v2227_v60, %v2235_v63  ;;  %v2563_v63 = vld [vmem:[%s5004_s25 + $0x10] sm:$0xff] }
0x116c   : > { %v2237_v1 = vmul.f32 %v2236_v0, %v2236_v0 }
0x116e   : > { %v2238_v2 = vsel %vm932_vm0, %v2237_v1, 0.0  ;;  %v2561_v1 = vld [vmem:[%s5004_s25] sm:$0xff] }
0x116f   : > { %2239 = vadd.xlane.f32.xlu0 %v2238_v2  ;;  %v3061_v2 = vld [vmem:[#allocation23] ss:$0 sm:$0xff] }
0x11f8   : > { %v2240_v7 = vpop.xlane.xlu0 %2239 }
0x11f9   : > { %v2241_v9 = vmul.f32 0.03125, %v2240_v7  ;;  %v2646_v7 = vld [vmem:[#allocation26 + $0x8] sm:$0xff] }
0x11fb   : > { %v2242_v10 = vadd.f32 1e-05, %v2241_v9  ;;  %v2645_v9 = vld [vmem:[#allocation26] sm:$0xff] }
0x11fd   : > { %3549 = vrsqrt.f32 %v2242_v10  ;;  %v3063_v10 = vld [vmem:[#allocation25] ss:$0 sm:$0xff] }
0x120a   : > { %v3550_v11 = vpop.eup %3549 }
0x120b   : > { %v2244_v13 = vmul.f32 %v3550_v11, %v2236_v0  ;;  %v2562_v0 = vld [vmem:[%s5004_s25 + $0x8] sm:$0xff] }
0x120d   : > { %v2251_v15 = vmul.f32 %v3041_v12, %v2244_v13 }
0x120f   : > { %v2258_v16 = vadd.f32 %v3042_v14, %v2251_v15  ;;  %v3065_v14 = vld [vmem:[%s5005_s17] ss:$0 sm:$0xff] }
0x1211   : > { %3271 = vmatmul.mubr.msk.f32.vlgmr.msra.gmra.mxu1 %vm932_vm0, %v2258_v16 }
0x1212   : > { %3300 = vmatprep.mubr.msk.f32.mxu1 %vm4100_vm1, %v4099_v8  ;;  %3293 = vmatpush3.msra.mxu1 %v2479_v49 }
0x1213   : > { %3294 = vmatprep.subr.mxu1 %v4099_v8 }
0x1214   : > { %3295 = vmatpush3.msra.mxu1 %v2478_v50 }
0x1215   : > { %3296 = vmatprep.subr.mxu1 %v4099_v8 }
0x1216   : > { %3297 = vmatpush3.msra.mxu1 %v2477_v51 }
0x1217   : > { %3298 = vmatprep.subr.mxu1 %v4099_v8 }
0x1218   : > { %3299 = vmatpush3.msra.mxu1 %v2476_v52 }
0x1219   : > { %3303 = vmatprep.subr.mxu1 %v4099_v8 }
0x12d1   : > { %v2341_v26 = vpop.f32.mrf.mxu1 }
0x12d2   : > { %v2342_v27 = vadd.f32 %v3047_v25, %v2341_v26 }
0x12d3   : > { %v3272_v28 = vpop.f32.mrf.mxu1 }
0x12d4   : > { %v2346_v30 = vmul.f32 0.044715, %v2342_v27  ;;  %v2345_v29 = vmul.f32 0.5, %v2342_v27 }
0x12d6   : > { %v2347_v31 = vmul.f32 %v2346_v30, %v2342_v27 }
0x12d8   : > { %v2348_v32 = vmul.f32 %v2347_v31, %v2342_v27 }
0x12da   : > { %v2349_v33 = vadd.f32 %v2348_v32, %v2342_v27 }
0x12dc   : > { %v2350_v34 = vmul.f32 0.7978846, %v2349_v33 }
0x12de   : > { %3551 = vtanh.f32 %v2350_v34 }
0x12eb   : > { %v3552_v35 = vpop.eup %3551 }
0x12ec   : > { %v2352_v36 = vadd.f32 1.0, %v3552_v35 }
0x12ee   : > { %v2353_v37 = vmul.f32 %v2352_v36, %v2345_v29 }
0x12f0   : > { %3290 = vmatmul.mubr.msk.f32.vlgmr.msra.gmra.mxu0 %vm1613_vm4, %v2353_v37 }
0x12f1   : > { %3318 = vmatprep.mubr.msk.f32.mxu0 %vm4100_vm1, %v4099_v8  ;;  %3315 = vmatpush3.msra.mxu0 %v2646_v7 }
0x12f2   : > { %3316 = vmatprep.subr.mxu0 %v4099_v8 }
0x12f3   : > { %3317 = vmatpush3.msra.mxu0 %v2645_v9 }
0x13b0   : > { %v2440_v39 = vpop.f32.mrf.mxu0 }
0x13b1   : > { %v2441_v40 = vadd.f32 %v3057_v38, %v2440_v39 }
0x13b2   : > { %v3291_v41 = vpop.f32.mrf.mxu0 }
0x13b3   : > { %v2444_v42 = vadd.f32 %v2441_v40, %v2258_v16 }
0x13b5   : > { %v2449_v43 = vsel %vm932_vm0, %v2444_v42, 0.0 }
0x13b6   : > { %2450 = vadd.xlane.f32.xlu0 %v2449_v43 }
0x143f   : > { %v2451_v44 = vpop.xlane.xlu0 %2450 }
0x1440   : > { %v2452_v45 = vmul.f32 0.03125, %v2451_v44 }
0x1442   : > { %v2453_v46 = vsub.f32 %v2444_v42, %v2452_v45 }
0x1444   : > { %v2454_v47 = vmul.f32 %v2453_v46, %v2453_v46 }
0x1446   : > { %v2455_v48 = vsel %vm932_vm0, %v2454_v47, 0.0 }
0x1447   : > { %2456 = vadd.xlane.f32.xlu1 %v2455_v48 }
0x14d0   : > { %v2457_v53 = vpop.xlane.xlu1 %2456 }
0x14d1   : > { %v2458_v54 = vmul.f32 0.03125, %v2457_v53 }
0x14d3   : > { %v2459_v55 = vadd.f32 1e-05, %v2458_v54 }
0x14d5   : > { %3553 = vrsqrt.f32 %v2459_v55 }
0x14e2   : > { %v3554_v56 = vpop.eup %3553 }
0x14e3   : > { %v2461_v58 = vmul.f32 %v3554_v56, %v2453_v46 }
0x14e5   : > { %v2468_v60 = vmul.f32 %v3059_v57, %v2461_v58 }
0x14e7   : > { %v2475_v61 = vadd.f32 %v3060_v59, %v2468_v60 }
0x14e9   : > { %3301 = vmatmul.mubr.msk.f32.vlgmr.msra.gmra.mxu1 %vm932_vm0, %v2475_v61 }
0x14ea   : > { %3311 = vmatprep.mubr.msk.f32.mxu1 %vm4100_vm1, %v4099_v8  ;;  %3304 = vmatpush3.msra.mxu1 %v2564_v62 }
0x14eb   : > { %3305 = vmatprep.subr.mxu1 %v4099_v8 }
0x14ec   : > { %3306 = vmatpush3.msra.mxu1 %v2563_v63 }
0x14ed   : > { %3307 = vmatprep.subr.mxu1 %v4099_v8 }
0x14ee   : > { %3308 = vmatpush3.msra.mxu1 %v2562_v0 }
0x14ef   : > { %3309 = vmatprep.subr.mxu1 %v4099_v8 }
0x14f0   : > { %3310 = vmatpush3.msra.mxu1 %v2561_v1 }
0x15a9   : > { %v2556_v3 = vpop.f32.mrf.mxu1 }
0x15aa   : > { %v2557_v4 = vadd.f32 %v3061_v2, %v2556_v3 }
0x15ab   : > { %v3302_v5 = vpop.f32.mrf.mxu1 }
0x15ac   : > { %3555 = vtanh.f32 %v2557_v4 }
0x15b9   : > { %v3556_v6 = vpop.eup %3555 }
0x15ba   : > { %3312 = vmatmul.mubr.msk.f32.vlgmr.msra.gmra.mxu1 %vm932_vm0, %v3556_v6 }
0x167a   : > { %v2641_v11 = vpop.f32.mrf.mxu1 }
0x167b   : > { %v2642_v12 = vadd.f32 %v3063_v10, %v2641_v11 }
0x167c   : > { %v3313_v13 = vpop.f32.mrf.mxu1 }
0x167d   : > { %3319 = vmatmul.mubr.msk.f32.vlgmr.msra.gmra.mxu0 %vm1048_vm2, %v2642_v12 }
0x173d   : > { %v2723_v15 = vpop.f32.mrf.mxu0 }
0x173e   : > { %v2724_v8 = vadd.f32 %v3065_v14, %v2723_v15 }
0x173f   : > { %v3320_v16 = vpop.f32.mrf.mxu0 }
0x1740   : > { %2727 = vst [vmem:[%s927_s9] sm:$0xff] %v2724_v8 }
0x1741   : > { %3990 = shalt.err (!%p3987_p12)
}
0x1742   : > { %s3991_s17 = scalar_lea.hbm %s4862_s8, 128  ;;  %s3995_s0 = scalar_lea.hbm %s5007_s7, 256 }
0x1743   : > { %p3992_p2 = scmp.ne.s32.totalorder %s4862_s8, %s3991_s17  ;;  %p3996_p7 = scmp.lt.s32.totalorder %s4862_s8, %s5007_s7 }
0x1744   : > { %p3997_p6 = scmp.lt.s32.totalorder %s3995_s0, %s3991_s17 }
0x1745   : > { %p3993_p5 = pnand %p3992_p2, %p5008_p0 }
0x1746   : > { %p3998_p8 = por %p3997_p6, %p3996_p7 }
0x1747   : > { %p3994_p11 = pneg %p3993_p5 }
0x1749   : > { %p3999_p13 = pnand %p3998_p8, %p3994_p11 }
0x174b   : > { %4002 = shalt.err (!%p3999_p13)
}
0x174c   : > { %3381 = dma.vmem_to_hbm [thread:$0]  (%p5008_p0), %s2743_s1, 128, %s4862_s8, %s2729_s19  }
0x174d PF: > { %s2754_s14 = sand.u32 1, %s4065_s3   ;;  %p5009_p1 = scmp.ne.s32.totalorder %s4978_s21, 0 }
0x174e   : > { %p5010_p3 = scmp.ge.s32.totalorder %s4077_s30, 2  ;;  %s2755_s13 = scalar_lea.sflag [#allocation4], %s2754_s14 }
0x1750   : > { %p3434_p4 = pnand %p5010_p3, %p5009_p1 }
0x1752   : > { %p3435_p9 = pneg %p3434_p4 }
0x1754   : > { %4060 = dma.done.wait (%p3435_p9), %s2755_s13, 128  }
0x1755   : > { %4062 = vsyncadd (%p3435_p9), %s2755_s13, 4294967168  ;;  %p45_p10 = scmp.ge.s32.totalorder %s4405_s2, 4   ;;  %s5011_s3 = smov %s4069_s28 }
0x1756   : > { %s5012_s28 = smov %s4073_s29  ;;  %s5013_s29 = smov %s4416_s5 }
0x1757   : > { %s5014_s30 = smov %s4405_s2  ;;  %47 = sbr.rel (!%p45_p10) target bundleno = 36 (0x24), region = 234 }
0x175c   :  { %2760 = vsyncpa [#allocation3], 1 }
0x175d   :  { %2762 = vsyncpa [#allocation3 + $0x1], 1 }
0x175e   :  { %2763 = vsyncpa [#allocation6], 1 }
0x175f   :  { %2765 = vsyncpa [#allocation6 + $0x1], 1 }
0x1760   :  { %2766 = vsyncpa [#allocation9], 1 }
0x1761   :  { %2767 = vsyncpa [#allocation12], 1 }
0x1762   :  { %2768 = vsyncpa [#allocation15], 1 }
0x1763   :  { %2769 = vsyncpa [#allocation18], 1 }
0x1764   :  { %2770 = vsyncpa [#allocation21], 1 }
0x1765   :  { %2771 = vsyncpa [#allocation24], 1 }
0x1766   :  { %2772 = vsyncpa [#allocation27], 1 }
0x1767   :  { %2773 = vsyncpa [#allocation4], 1 }
0x1768   :  { %2775 = vsyncpa [#allocation4 + $0x1], 1 }

</bundles_post_ra>
